<compile_context>
chip_gen: v5e
topology: v5e:2x2
jax: 0.10.0
libtpu: 0.0.40
codegen_flags: <defaults>
</compile_context>

<pallas_src>
import functools

import jax
import jax.numpy as jnp
from jax.experimental import pallas as pl
from jax.experimental.pallas import tpu as pltpu


# ----------------------------- Pallas kernel ------------------------------- #

def _make_decoder_kernel(L, H, B, V):
    """Fused multi-step decoder kernel for static (L, H, B, V)."""

    def kernel(tok_ref,            # (T, B, 1) int32  VMEM (full block, resident)
               emb_ref,            # (V, E)           VMEM (resident)
               *refs):
        # refs layout:
        #   w_ih[l]        : (I_l, 4H)   W_ih.T per layer      (resident)
        #   w_hh[l]        : (H,  4H)    W_hh.T per layer      (resident)
        #   b[l]           : (1,  4H)    b_ih + b_hh           (resident)
        #   state0_ref     : (2, L, B, H) initial [h; c]       (resident)
        #   fcw_ref        : (H, O_pad)  FC weight (transposed, lane-padded)
        #   fcb_ref        : (1, O_pad)  FC bias   (lane-padded)
        #   pred_ref       : (1, B, O_pad)  per-step output block
        #   state_out_ref  : (2, L, B, H)   final [h; c] output
        #   h_sc, c_sc     : (L, B, H)   VMEM scratch, persistent across steps
        w_ih = refs[0:L]
        w_hh = refs[L:2 * L]
        b = refs[2 * L:3 * L]
        state0_ref = refs[3 * L]
        fcw_ref = refs[3 * L + 1]
        fcb_ref = refs[3 * L + 2]
        pred_ref = refs[3 * L + 3]
        state_out_ref = refs[3 * L + 4]
        h_sc = refs[3 * L + 5]
        c_sc = refs[3 * L + 6]

        t = pl.program_id(0)

        # Load initial state into persistent VMEM scratch once.
        @pl.when(t == 0)
        def _():
            h_sc[...] = state0_ref[0]
            c_sc[...] = state0_ref[1]

        # ---- Embedding lookup as a one-hot MXU dot (no serialized gathers) ----
        tok = tok_ref[t]                                            # (B, 1) int32
        onehot = (tok == jax.lax.broadcasted_iota(jnp.int32, (B, V), 1)
                  ).astype(jnp.float32)                              # (B, V)
        layer_in = jnp.dot(onehot, emb_ref[...],
                           preferred_element_type=jnp.float32)       # (B, E)
        # Dropout on the embedding: eval-mode identity.

        # Per-lane pre-scale so a single tanh pass serves both sigmoid & tanh:
        # sigmoid(x) = 0.5 * (tanh(0.5 * x) + 1).  g-gate lanes keep scale 1.
        lane = jax.lax.broadcasted_iota(jnp.int32, (1, 4 * H), 1)
        is_g = (lane >= 2 * H) & (lane < 3 * H)
        scale = jnp.where(is_g, jnp.float32(1.0), jnp.float32(0.5))  # (1, 4H)

        for l in range(L):
            h_prev = h_sc[l]                                         # (B, H)
            c_prev = c_sc[l]                                         # (B, H)
            # Two accumulating MXU dots instead of a lane-concat + one dot.
            gates = (jnp.dot(layer_in, w_ih[l][...],
                             preferred_element_type=jnp.float32)
                     + jnp.dot(h_prev, w_hh[l][...],
                               preferred_element_type=jnp.float32)
                     + b[l][...])                                    # (B, 4H)

            tnh = jnp.tanh(gates * scale)        # single EUP pass over (B, 4H)
            sig = 0.5 * (tnh + 1.0)              # VPU: sigmoid on i/f/o lanes
            i_g = sig[:, 0 * H:1 * H]            # PyTorch gate order: i, f, g, o
            f_g = sig[:, 1 * H:2 * H]
            g_g = tnh[:, 2 * H:3 * H]
            o_g = sig[:, 3 * H:4 * H]

            c_new = f_g * c_prev + i_g * g_g
            h_new = o_g * jnp.tanh(c_new)

            h_sc[l] = h_new                       # stays in VMEM across steps
            c_sc[l] = c_new
            layer_in = h_new                      # inter-layer dropout = identity

        # FC projection into a lane-dense (B, O_pad) slab, one block per step.
        pred_ref[0] = (jnp.dot(layer_in, fcw_ref[...],
                               preferred_element_type=jnp.float32)
                       + fcb_ref[...]).astype(pred_ref.dtype)

        # Write the merged final state back to HBM only once, on the last step.
        @pl.when(t == pl.num_programs(0) - 1)
        def _():
            state_out_ref[0] = h_sc[...]
            state_out_ref[1] = c_sc[...]

    return kernel


# ------------------------------ Wrapper ------------------------------------ #

def _const_spec(shape):
    n = len(shape)
    return pl.BlockSpec(shape, lambda t, n=n: (0,) * n)


def _decoder_decode(params, x_seq, hidden, cell, *, output_size):
    """Runs T decoder steps fully inside one kernel (teacher-forced tokens).
        x_seq: (T, B) int32 ; hidden/cell: (L, B, H)
      returns predictions (T, B, output_size), hidden (L, B, H), cell (L, B, H)."""
    T, B = x_seq.shape
    L, _, H = hidden.shape
    V, _ = params["embedding"].shape
    o_pad = params["fc_w_t"].shape[1]

    tok = x_seq.astype(jnp.int32).reshape(T, B, 1)
    state0 = jnp.stack([hidden, cell])                    # (2, L, B, H)

    kernel = _make_decoder_kernel(L, H, B, V)

    inputs = ([tok, params["embedding"]]
              + list(params["w_ih_t"])
              + list(params["w_hh_t"])
              + list(params["b"])
              + [state0, params["fc_w_t"], params["fc_b"]])

    grid_spec = pltpu.PrefetchScalarGridSpec(
        num_scalar_prefetch=0,
        grid=(T,),
        in_specs=[_const_spec(a.shape) for a in inputs],
        out_specs=(
            pl.BlockSpec((1, B, o_pad), lambda t: (t, 0, 0)),
            pl.BlockSpec((2, L, B, H), lambda t: (0, 0, 0, 0)),
        ),
        scratch_shapes=[
            pltpu.VMEM((L, B, H), jnp.float32),   # h state, step-persistent
            pltpu.VMEM((L, B, H), jnp.float32),   # c state, step-persistent
        ],
    )

    pred_pad, state_new = pl.pallas_call(
        kernel,
        out_shape=(
            jax.ShapeDtypeStruct((T, B, o_pad), jnp.float32),
            jax.ShapeDtypeStruct((2, L, B, H), jnp.float32),
        ),
        grid_spec=grid_spec,
        compiler_params=pltpu.CompilerParams(
            dimension_semantics=("arbitrary",)),   # recurrence over time
    )(*inputs)

    return pred_pad[:, :, :output_size], state_new[0], state_new[1]


def _decoder_forward(params, x_tokens, hidden, cell, *, output_size):
    """Exact single-step forward of the PyTorch module (T = 1)."""
    pred, h_new, c_new = _decoder_decode(params, x_tokens[None, :], hidden, cell,
                                         output_size=output_size)
    return pred[0], h_new, c_new


decoder_decode = jax.jit(_decoder_decode, static_argnames=("output_size",))
decoder_forward = jax.jit(_decoder_forward, static_argnames=("output_size",))


# --------------------------- Pure-JAX reference ----------------------------- #

def _reference_decode(params, x_seq, hidden, cell, output_size):
    H = hidden.shape[-1]
    preds = []
    for t in range(x_seq.shape[0]):
        layer_in = jnp.take(params["embedding"], x_seq[t], axis=0)
        new_h, new_c = [], []
        for l in range(hidden.shape[0]):
            gates = (layer_in @ params["w_ih_t"][l]
                     + hidden[l] @ params["w_hh_t"][l] + params["b"][l])
            i_g = jax.nn.sigmoid(gates[:, 0 * H:1 * H])
            f_g = jax.nn.sigmoid(gates[:, 1 * H:2 * H])
            g_g = jnp.tanh(gates[:, 2 * H:3 * H])
            o_g = jax.nn.sigmoid(gates[:, 3 * H:4 * H])
            c_n = f_g * cell[l] + i_g * g_g
            h_n = o_g * jnp.tanh(c_n)
            new_h.append(h_n)
            new_c.append(c_n)
            layer_in = h_n
        hidden = jnp.stack(new_h)
        cell = jnp.stack(new_c)
        preds.append(layer_in @ params["fc_w_t"] + params["fc_b"])
    pred = jnp.stack(preds)[:, :, :output_size]
    return pred, hidden, cell


# --------------------------- Parameter init --------------------------------- #

def init_params(key, input_size, embedding_size, hidden_size, num_layers,
                output_size):
    """PyTorch-style uniform(-1/sqrt(H), 1/sqrt(H)) for LSTM/FC; normal embedding.

    Stored layout (kernel-friendly):
      w_ih_t[l] : (I_l, 4H)   W_ih.T
      w_hh_t[l] : (H,   4H)   W_hh.T
      b[l]      : (1,   4H)   b_ih + b_hh
      fc_w_t    : (H, O_pad)  lane-padded transpose of (O, H)
      fc_b      : (1, O_pad)
    """
    H = hidden_size
    bound = 1.0 / float(H) ** 0.5
    o_pad = max(128, ((output_size + 127) // 128) * 128)

    ks = list(jax.random.split(key, 1 + 4 * num_layers + 2))
    kidx = 0

    def nxt():
        nonlocal kidx
        k = ks[kidx]
        kidx += 1
        return k

    embedding = jax.random.normal(nxt(), (input_size, embedding_size),
                                  dtype=jnp.float32)

    w_ih_t, w_hh_t, biases = [], [], []
    for l in range(num_layers):
        in_dim = embedding_size if l == 0 else hidden_size
        w_ih = jax.random.uniform(nxt(), (4 * H, in_dim),
                                  minval=-bound, maxval=bound, dtype=jnp.float32)
        w_hh = jax.random.uniform(nxt(), (4 * H, H),
                                  minval=-bound, maxval=bound, dtype=jnp.float32)
        b_ih = jax.random.uniform(nxt(), (4 * H,),
                                  minval=-bound, maxval=bound, dtype=jnp.float32)
        b_hh = jax.random.uniform(nxt(), (4 * H,),
                                  minval=-bound, maxval=bound, dtype=jnp.float32)
        w_ih_t.append(w_ih.T)                          # (I_l, 4H)
        w_hh_t.append(w_hh.T)                          # (H, 4H)
        biases.append((b_ih + b_hh)[None, :])          # (1, 4H)

    fc_w = jax.random.uniform(nxt(), (output_size, H),
                              minval=-bound, maxval=bound, dtype=jnp.float32)
    fc_b = jax.random.uniform(nxt(), (output_size,),
                              minval=-bound, maxval=bound, dtype=jnp.float32)

    fc_w_t = jnp.zeros((H, o_pad), jnp.float32).at[:, :output_size].set(fc_w.T)
    fc_b_p = jnp.zeros((1, o_pad), jnp.float32).at[0, :output_size].set(fc_b)

    return {
        "embedding": embedding,
        "w_ih_t": w_ih_t,
        "w_hh_t": w_hh_t,
        "b": biases,
        "fc_w_t": fc_w_t,
        "fc_b": fc_b_p,
    }


# ------------------------------- Main --------------------------------------- #

if __name__ == "__main__":
    input_size = 128      # decoder vocab size
    embedding_size = 64
    hidden_size = 128
    num_layers = 3
    output_size = 100
    batch = 8
    steps = 4             # decode steps fused inside one kernel launch

    key = jax.random.PRNGKey(0)
    k_params, k_x, k_h, k_c = jax.random.split(key, 4)

    params = init_params(k_params, input_size, embedding_size, hidden_size,
                         num_layers, output_size)

    x_seq = jax.random.randint(k_x, (steps, batch), 0, input_size,
                               dtype=jnp.int32)
    hidden = jax.random.normal(k_h, (num_layers, batch, hidden_size),
                               dtype=jnp.float32)
    cell = jax.random.normal(k_c, (num_layers, batch, hidden_size),
                             dtype=jnp.float32)

    # ---- Single-step: exact semantics of Decoder.forward ----
    pred1, h1, c1 = decoder_forward(params, x_seq[0], hidden, cell,
                                    output_size=output_size)
    jax.block_until_ready((pred1, h1, c1))

    assert pred1.shape == (batch, output_size)
    assert h1.shape == (num_layers, batch, hidden_size)
    assert c1.shape == (num_layers, batch, hidden_size)
    assert bool(jnp.all(jnp.isfinite(pred1)))

    ref_p1, ref_h1, ref_c1 = _reference_decode(params, x_seq[:1], hidden, cell,
                                               output_size)
    assert float(jnp.max(jnp.abs(pred1 - ref_p1[0]))) < 2e-2
    assert float(jnp.max(jnp.abs(h1 - ref_h1))) < 2e-2
    assert float(jnp.max(jnp.abs(c1 - ref_c1))) < 2e-2

    # ---- Multi-step: decode loop fused inside the kernel (weights/state
    #      resident in VMEM across all steps) ----
    predT, hT, cT = decoder_decode(params, x_seq, hidden, cell,
                                   output_size=output_size)
    jax.block_until_ready((predT, hT, cT))

    assert predT.shape == (steps, batch, output_size)
    ref_pT, ref_hT, ref_cT = _reference_decode(params, x_seq, hidden, cell,
                                               output_size)
    assert float(jnp.max(jnp.abs(predT - ref_pT))) < 2e-2
    assert float(jnp.max(jnp.abs(hT - ref_hT))) < 2e-2
    assert float(jnp.max(jnp.abs(cT - ref_cT))) < 2e-2

    print("KERNEL_OK")
</pallas_src>

<mosaic_0001>
module attributes {stable_mosaic.version = 11 : i64} {
  func.func @kernel(%arg0: i32, %arg1: memref<1x8x1xi32, #tpu.memory_space<vmem>>, %arg2: memref<128x64xf32, #tpu.memory_space<vmem>>, %arg3: memref<64x512xf32, #tpu.memory_space<vmem>>, %arg4: memref<128x512xf32, #tpu.memory_space<vmem>>, %arg5: memref<128x512xf32, #tpu.memory_space<vmem>>, %arg6: memref<128x512xf32, #tpu.memory_space<vmem>>, %arg7: memref<128x512xf32, #tpu.memory_space<vmem>>, %arg8: memref<128x512xf32, #tpu.memory_space<vmem>>, %arg9: memref<1x512xf32, #tpu.memory_space<vmem>>, %arg10: memref<1x512xf32, #tpu.memory_space<vmem>>, %arg11: memref<1x512xf32, #tpu.memory_space<vmem>>, %arg12: memref<2x3x8x128xf32, #tpu.memory_space<vmem>>, %arg13: memref<128x128xf32, #tpu.memory_space<vmem>>, %arg14: memref<1x128xf32, #tpu.memory_space<vmem>>, %arg15: memref<1x8x128xf32, #tpu.memory_space<vmem>>, %arg16: memref<2x3x8x128xf32, #tpu.memory_space<vmem>>, %arg17: memref<3x8x128xf32, #tpu.memory_space<vmem>>, %arg18: memref<3x8x128xf32, #tpu.memory_space<vmem>>) attributes {dimension_semantics = [#tpu.dimension_semantics<arbitrary>], iteration_bounds = array<i64: 1>, scalar_prefetch = 0 : i64, scratch_operands = 2 : i64, tpu.core_type = #tpu.core_type<tc>, window_params = [{pipeline_mode = #tpu.pipeline_mode<synchronous>, transform_indices = @transform_0, window_bounds = array<i64: 1, 8, 1>}, {pipeline_mode = #tpu.pipeline_mode<synchronous>, transform_indices = @transform_1, window_bounds = array<i64: 128, 64>}, {pipeline_mode = #tpu.pipeline_mode<synchronous>, transform_indices = @transform_2, window_bounds = array<i64: 64, 512>}, {pipeline_mode = #tpu.pipeline_mode<synchronous>, transform_indices = @transform_3, window_bounds = array<i64: 128, 512>}, {pipeline_mode = #tpu.pipeline_mode<synchronous>, transform_indices = @transform_4, window_bounds = array<i64: 128, 512>}, {pipeline_mode = #tpu.pipeline_mode<synchronous>, transform_indices = @transform_5, window_bounds = array<i64: 128, 512>}, {pipeline_mode = #tpu.pipeline_mode<synchronous>, transform_indices = @transform_6, window_bounds = array<i64: 128, 512>}, {pipeline_mode = #tpu.pipeline_mode<synchronous>, transform_indices = @transform_7, window_bounds = array<i64: 128, 512>}, {pipeline_mode = #tpu.pipeline_mode<synchronous>, transform_indices = @transform_8, window_bounds = array<i64: 1, 512>}, {pipeline_mode = #tpu.pipeline_mode<synchronous>, transform_indices = @transform_9, window_bounds = array<i64: 1, 512>}, {pipeline_mode = #tpu.pipeline_mode<synchronous>, transform_indices = @transform_10, window_bounds = array<i64: 1, 512>}, {pipeline_mode = #tpu.pipeline_mode<synchronous>, transform_indices = @transform_11, window_bounds = array<i64: 2, 3, 8, 128>}, {pipeline_mode = #tpu.pipeline_mode<synchronous>, transform_indices = @transform_12, window_bounds = array<i64: 128, 128>}, {pipeline_mode = #tpu.pipeline_mode<synchronous>, transform_indices = @transform_13, window_bounds = array<i64: 1, 128>}, {transform_indices = @transform_14, window_bounds = array<i64: 1, 8, 128>}, {pipeline_mode = #tpu.pipeline_mode<synchronous>, transform_indices = @transform_15, window_bounds = array<i64: 2, 3, 8, 128>}]} {
    %c0_i32 = arith.constant 0 : i32
    %0 = arith.cmpi eq, %arg0, %c0_i32 : i32
    %1 = arith.extui %0 : i1 to i32
    %c0_i32_0 = arith.constant 0 : i32
    %2 = arith.cmpi ne, %1, %c0_i32_0 : i32
    scf.if %2 {
      %c0_80 = arith.constant 0 : index
      %c0_81 = arith.constant 0 : index
      %c0_82 = arith.constant 0 : index
      %c0_83 = arith.constant 0 : index
      %135 = vector.load %arg12[%c0_80, %c0_81, %c0_82, %c0_83] : memref<2x3x8x128xf32, #tpu.memory_space<vmem>>, vector<1x3x8x128xf32>
      %136 = vector.shape_cast %135 : vector<1x3x8x128xf32> to vector<3x8x128xf32>
      %c0_84 = arith.constant 0 : index
      %c0_85 = arith.constant 0 : index
      %c0_86 = arith.constant 0 : index
      %137 = vector.load %arg17[%c0_84, %c0_85, %c0_86] : memref<3x8x128xf32, #tpu.memory_space<vmem>>, vector<3x8x128xf32>
      tpu.vector_store %arg17[%c0_84, %c0_85, %c0_86], %136 {strides = array<i32>} : memref<3x8x128xf32, #tpu.memory_space<vmem>>, vector<3x8x128xf32>,
      %c1_87 = arith.constant 1 : index
      %c0_88 = arith.constant 0 : index
      %c0_89 = arith.constant 0 : index
      %c0_90 = arith.constant 0 : index
      %138 = vector.load %arg12[%c1_87, %c0_88, %c0_89, %c0_90] : memref<2x3x8x128xf32, #tpu.memory_space<vmem>>, vector<1x3x8x128xf32>
      %139 = vector.shape_cast %138 : vector<1x3x8x128xf32> to vector<3x8x128xf32>
      %c0_91 = arith.constant 0 : index
      %c0_92 = arith.constant 0 : index
      %c0_93 = arith.constant 0 : index
      %140 = vector.load %arg18[%c0_91, %c0_92, %c0_93] : memref<3x8x128xf32, #tpu.memory_space<vmem>>, vector<3x8x128xf32>
      tpu.vector_store %arg18[%c0_91, %c0_92, %c0_93], %139 {strides = array<i32>} : memref<3x8x128xf32, #tpu.memory_space<vmem>>, vector<3x8x128xf32>,
    } else {
    }
    %3 = arith.index_cast %arg0 : i32 to index
    %c0 = arith.constant 0 : index
    %c0_1 = arith.constant 0 : index
    %4 = vector.load %arg1[%3, %c0, %c0_1] : memref<1x8x1xi32, #tpu.memory_space<vmem>>, vector<1x8x1xi32>
    %5 = vector.shape_cast %4 : vector<1x8x1xi32> to vector<8x1xi32>
    %6 = tpu.iota {dimensions = array<i32: 1>} : vector<8x128xi32>
    %7 = vector.broadcast %5 : vector<8x1xi32> to vector<8x128xi32>
    %8 = arith.cmpi eq, %7, %6 : vector<8x128xi32>
    %9 = arith.extui %8 : vector<8x128xi1> to vector<8x128xi32>
    %10 = arith.sitofp %9 : vector<8x128xi32> to vector<8x128xf32>
    %c0_2 = arith.constant 0 : index
    %c0_3 = arith.constant 0 : index
    %11 = vector.load %arg2[%c0_2, %c0_3] : memref<128x64xf32, #tpu.memory_space<vmem>>, vector<128x64xf32>
    %cst = arith.constant dense<0.000000e+00> : vector<8x64xf32>
    %12 = tpu.matmul %10, %11, %cst {dimension_numbers = #tpu.dot_dimension_numbers<[1], [0], [0], [1], [0, 0, 1, 1], [], []>} : vector<8x128xf32>, vector<128x64xf32>, vector<8x64xf32> -> vector<8x64xf32>
    %13 = tpu.iota {dimensions = array<i32: 1>} : vector<1x512xi32>
    %c256_i32 = arith.constant 256 : i32
    %14 = vector.broadcast %c256_i32 : i32 to vector<1x512xi32>
    %15 = arith.cmpi sge, %13, %14 : vector<1x512xi32>
    %c384_i32 = arith.constant 384 : i32
    %16 = vector.broadcast %c384_i32 : i32 to vector<1x512xi32>
    %17 = arith.cmpi slt, %13, %16 : vector<1x512xi32>
    %18 = arith.andi %15, %17 : vector<1x512xi1>
    %cst_4 = arith.constant 1.000000e+00 : f32
    %cst_5 = arith.constant 5.000000e-01 : f32
    %19 = vector.broadcast %cst_4 : f32 to vector<1x512xf32>
    %20 = vector.broadcast %cst_5 : f32 to vector<1x512xf32>
    %21 = arith.select %18, %19, %20 : vector<1x512xi1>, vector<1x512xf32>
    %c0_6 = arith.constant 0 : index
    %c0_7 = arith.constant 0 : index
    %c0_8 = arith.constant 0 : index
    %22 = vector.load %arg17[%c0_6, %c0_7, %c0_8] : memref<3x8x128xf32, #tpu.memory_space<vmem>>, vector<1x8x128xf32>
    %23 = vector.shape_cast %22 : vector<1x8x128xf32> to vector<8x128xf32>
    %c0_9 = arith.constant 0 : index
    %c0_10 = arith.constant 0 : index
    %c0_11 = arith.constant 0 : index
    %24 = vector.load %arg18[%c0_9, %c0_10, %c0_11] : memref<3x8x128xf32, #tpu.memory_space<vmem>>, vector<1x8x128xf32>
    %25 = vector.shape_cast %24 : vector<1x8x128xf32> to vector<8x128xf32>
    %c0_12 = arith.constant 0 : index
    %c0_13 = arith.constant 0 : index
    %26 = vector.load %arg3[%c0_12, %c0_13] : memref<64x512xf32, #tpu.memory_space<vmem>>, vector<64x512xf32>
    %cst_14 = arith.constant dense<0.000000e+00> : vector<8x512xf32>
    %27 = tpu.matmul %12, %26, %cst_14 {dimension_numbers = #tpu.dot_dimension_numbers<[1], [0], [0], [1], [0, 0, 1, 1], [], []>} : vector<8x64xf32>, vector<64x512xf32>, vector<8x512xf32> -> vector<8x512xf32>
    %c0_15 = arith.constant 0 : index
    %c0_16 = arith.constant 0 : index
    %28 = vector.load %arg6[%c0_15, %c0_16] : memref<128x512xf32, #tpu.memory_space<vmem>>, vector<128x512xf32>
    %cst_17 = arith.constant dense<0.000000e+00> : vector<8x512xf32>
    %29 = tpu.matmul %23, %28, %cst_17 {dimension_numbers = #tpu.dot_dimension_numbers<[1], [0], [0], [1], [0, 0, 1, 1], [], []>} : vector<8x128xf32>, vector<128x512xf32>, vector<8x512xf32> -> vector<8x512xf32>
    %30 = arith.addf %27, %29 : vector<8x512xf32>
    %c0_18 = arith.constant 0 : index
    %c0_19 = arith.constant 0 : index
    %31 = vector.load %arg9[%c0_18, %c0_19] : memref<1x512xf32, #tpu.memory_space<vmem>>, vector<1x512xf32>
    %32 = vector.broadcast %31 : vector<1x512xf32> to vector<8x512xf32>
    %33 = arith.addf %30, %32 : vector<8x512xf32>
    %34 = vector.broadcast %21 : vector<1x512xf32> to vector<8x512xf32>
    %35 = arith.mulf %33, %34 : vector<8x512xf32>
    %36 = math.tanh %35 : vector<8x512xf32>
    %cst_20 = arith.constant 1.000000e+00 : f32
    %37 = vector.broadcast %cst_20 : f32 to vector<8x512xf32>
    %38 = arith.addf %36, %37 : vector<8x512xf32>
    %cst_21 = arith.constant 5.000000e-01 : f32
    %39 = vector.broadcast %cst_21 : f32 to vector<8x512xf32>
    %40 = arith.mulf %39, %38 : vector<8x512xf32>
    %41 = vector.extract_strided_slice %40 {offsets = [0, 0], sizes = [8, 128], strides = [1, 1]} : vector<8x512xf32> to vector<8x128xf32>
    %42 = vector.extract_strided_slice %40 {offsets = [0, 128], sizes = [8, 128], strides = [1, 1]} : vector<8x512xf32> to vector<8x128xf32>
    %43 = vector.extract_strided_slice %36 {offsets = [0, 256], sizes = [8, 128], strides = [1, 1]} : vector<8x512xf32> to vector<8x128xf32>
    %44 = vector.extract_strided_slice %40 {offsets = [0, 384], sizes = [8, 128], strides = [1, 1]} : vector<8x512xf32> to vector<8x128xf32>
    %45 = arith.mulf %42, %25 : vector<8x128xf32>
    %46 = arith.mulf %41, %43 : vector<8x128xf32>
    %47 = arith.addf %45, %46 : vector<8x128xf32>
    %48 = math.tanh %47 : vector<8x128xf32>
    %49 = arith.mulf %44, %48 : vector<8x128xf32>
    %c0_22 = arith.constant 0 : index
    %c0_23 = arith.constant 0 : index
    %c0_24 = arith.constant 0 : index
    %50 = vector.load %arg17[%c0_22, %c0_23, %c0_24] : memref<3x8x128xf32, #tpu.memory_space<vmem>>, vector<1x8x128xf32>
    %51 = vector.shape_cast %50 : vector<1x8x128xf32> to vector<8x128xf32>
    %52 = vector.shape_cast %49 : vector<8x128xf32> to vector<1x8x128xf32>
    tpu.vector_store %arg17[%c0_22, %c0_23, %c0_24], %52 {strides = array<i32>} : memref<3x8x128xf32, #tpu.memory_space<vmem>>, vector<1x8x128xf32>,
    %c0_25 = arith.constant 0 : index
    %c0_26 = arith.constant 0 : index
    %c0_27 = arith.constant 0 : index
    %53 = vector.load %arg18[%c0_25, %c0_26, %c0_27] : memref<3x8x128xf32, #tpu.memory_space<vmem>>, vector<1x8x128xf32>
    %54 = vector.shape_cast %53 : vector<1x8x128xf32> to vector<8x128xf32>
    %55 = vector.shape_cast %47 : vector<8x128xf32> to vector<1x8x128xf32>
    tpu.vector_store %arg18[%c0_25, %c0_26, %c0_27], %55 {strides = array<i32>} : memref<3x8x128xf32, #tpu.memory_space<vmem>>, vector<1x8x128xf32>,
    %c1 = arith.constant 1 : index
    %c0_28 = arith.constant 0 : index
    %c0_29 = arith.constant 0 : index
    %56 = vector.load %arg17[%c1, %c0_28, %c0_29] : memref<3x8x128xf32, #tpu.memory_space<vmem>>, vector<1x8x128xf32>
    %57 = vector.shape_cast %56 : vector<1x8x128xf32> to vector<8x128xf32>
    %c1_30 = arith.constant 1 : index
    %c0_31 = arith.constant 0 : index
    %c0_32 = arith.constant 0 : index
    %58 = vector.load %arg18[%c1_30, %c0_31, %c0_32] : memref<3x8x128xf32, #tpu.memory_space<vmem>>, vector<1x8x128xf32>
    %59 = vector.shape_cast %58 : vector<1x8x128xf32> to vector<8x128xf32>
    %c0_33 = arith.constant 0 : index
    %c0_34 = arith.constant 0 : index
    %60 = vector.load %arg4[%c0_33, %c0_34] : memref<128x512xf32, #tpu.memory_space<vmem>>, vector<128x512xf32>
    %cst_35 = arith.constant dense<0.000000e+00> : vector<8x512xf32>
    %61 = tpu.matmul %49, %60, %cst_35 {dimension_numbers = #tpu.dot_dimension_numbers<[1], [0], [0], [1], [0, 0, 1, 1], [], []>} : vector<8x128xf32>, vector<128x512xf32>, vector<8x512xf32> -> vector<8x512xf32>
    %c0_36 = arith.constant 0 : index
    %c0_37 = arith.constant 0 : index
    %62 = vector.load %arg7[%c0_36, %c0_37] : memref<128x512xf32, #tpu.memory_space<vmem>>, vector<128x512xf32>
    %cst_38 = arith.constant dense<0.000000e+00> : vector<8x512xf32>
    %63 = tpu.matmul %57, %62, %cst_38 {dimension_numbers = #tpu.dot_dimension_numbers<[1], [0], [0], [1], [0, 0, 1, 1], [], []>} : vector<8x128xf32>, vector<128x512xf32>, vector<8x512xf32> -> vector<8x512xf32>
    %64 = arith.addf %61, %63 : vector<8x512xf32>
    %c0_39 = arith.constant 0 : index
    %c0_40 = arith.constant 0 : index
    %65 = vector.load %arg10[%c0_39, %c0_40] : memref<1x512xf32, #tpu.memory_space<vmem>>, vector<1x512xf32>
    %66 = vector.broadcast %65 : vector<1x512xf32> to vector<8x512xf32>
    %67 = arith.addf %64, %66 : vector<8x512xf32>
    %68 = vector.broadcast %21 : vector<1x512xf32> to vector<8x512xf32>
    %69 = arith.mulf %67, %68 : vector<8x512xf32>
    %70 = math.tanh %69 : vector<8x512xf32>
    %cst_41 = arith.constant 1.000000e+00 : f32
    %71 = vector.broadcast %cst_41 : f32 to vector<8x512xf32>
    %72 = arith.addf %70, %71 : vector<8x512xf32>
    %cst_42 = arith.constant 5.000000e-01 : f32
    %73 = vector.broadcast %cst_42 : f32 to vector<8x512xf32>
    %74 = arith.mulf %73, %72 : vector<8x512xf32>
    %75 = vector.extract_strided_slice %74 {offsets = [0, 0], sizes = [8, 128], strides = [1, 1]} : vector<8x512xf32> to vector<8x128xf32>
    %76 = vector.extract_strided_slice %74 {offsets = [0, 128], sizes = [8, 128], strides = [1, 1]} : vector<8x512xf32> to vector<8x128xf32>
    %77 = vector.extract_strided_slice %70 {offsets = [0, 256], sizes = [8, 128], strides = [1, 1]} : vector<8x512xf32> to vector<8x128xf32>
    %78 = vector.extract_strided_slice %74 {offsets = [0, 384], sizes = [8, 128], strides = [1, 1]} : vector<8x512xf32> to vector<8x128xf32>
    %79 = arith.mulf %76, %59 : vector<8x128xf32>
    %80 = arith.mulf %75, %77 : vector<8x128xf32>
    %81 = arith.addf %79, %80 : vector<8x128xf32>
    %82 = math.tanh %81 : vector<8x128xf32>
    %83 = arith.mulf %78, %82 : vector<8x128xf32>
    %c1_43 = arith.constant 1 : index
    %c0_44 = arith.constant 0 : index
    %c0_45 = arith.constant 0 : index
    %84 = vector.load %arg17[%c1_43, %c0_44, %c0_45] : memref<3x8x128xf32, #tpu.memory_space<vmem>>, vector<1x8x128xf32>
    %85 = vector.shape_cast %84 : vector<1x8x128xf32> to vector<8x128xf32>
    %86 = vector.shape_cast %83 : vector<8x128xf32> to vector<1x8x128xf32>
    tpu.vector_store %arg17[%c1_43, %c0_44, %c0_45], %86 {strides = array<i32>} : memref<3x8x128xf32, #tpu.memory_space<vmem>>, vector<1x8x128xf32>,
    %c1_46 = arith.constant 1 : index
    %c0_47 = arith.constant 0 : index
    %c0_48 = arith.constant 0 : index
    %87 = vector.load %arg18[%c1_46, %c0_47, %c0_48] : memref<3x8x128xf32, #tpu.memory_space<vmem>>, vector<1x8x128xf32>
    %88 = vector.shape_cast %87 : vector<1x8x128xf32> to vector<8x128xf32>
    %89 = vector.shape_cast %81 : vector<8x128xf32> to vector<1x8x128xf32>
    tpu.vector_store %arg18[%c1_46, %c0_47, %c0_48], %89 {strides = array<i32>} : memref<3x8x128xf32, #tpu.memory_space<vmem>>, vector<1x8x128xf32>,
    %c2 = arith.constant 2 : index
    %c0_49 = arith.constant 0 : index
    %c0_50 = arith.constant 0 : index
    %90 = vector.load %arg17[%c2, %c0_49, %c0_50] : memref<3x8x128xf32, #tpu.memory_space<vmem>>, vector<1x8x128xf32>
    %91 = vector.shape_cast %90 : vector<1x8x128xf32> to vector<8x128xf32>
    %c2_51 = arith.constant 2 : index
    %c0_52 = arith.constant 0 : index
    %c0_53 = arith.constant 0 : index
    %92 = vector.load %arg18[%c2_51, %c0_52, %c0_53] : memref<3x8x128xf32, #tpu.memory_space<vmem>>, vector<1x8x128xf32>
    %93 = vector.shape_cast %92 : vector<1x8x128xf32> to vector<8x128xf32>
    %c0_54 = arith.constant 0 : index
    %c0_55 = arith.constant 0 : index
    %94 = vector.load %arg5[%c0_54, %c0_55] : memref<128x512xf32, #tpu.memory_space<vmem>>, vector<128x512xf32>
    %cst_56 = arith.constant dense<0.000000e+00> : vector<8x512xf32>
    %95 = tpu.matmul %83, %94, %cst_56 {dimension_numbers = #tpu.dot_dimension_numbers<[1], [0], [0], [1], [0, 0, 1, 1], [], []>} : vector<8x128xf32>, vector<128x512xf32>, vector<8x512xf32> -> vector<8x512xf32>
    %c0_57 = arith.constant 0 : index
    %c0_58 = arith.constant 0 : index
    %96 = vector.load %arg8[%c0_57, %c0_58] : memref<128x512xf32, #tpu.memory_space<vmem>>, vector<128x512xf32>
    %cst_59 = arith.constant dense<0.000000e+00> : vector<8x512xf32>
    %97 = tpu.matmul %91, %96, %cst_59 {dimension_numbers = #tpu.dot_dimension_numbers<[1], [0], [0], [1], [0, 0, 1, 1], [], []>} : vector<8x128xf32>, vector<128x512xf32>, vector<8x512xf32> -> vector<8x512xf32>
    %98 = arith.addf %95, %97 : vector<8x512xf32>
    %c0_60 = arith.constant 0 : index
    %c0_61 = arith.constant 0 : index
    %99 = vector.load %arg11[%c0_60, %c0_61] : memref<1x512xf32, #tpu.memory_space<vmem>>, vector<1x512xf32>
    %100 = vector.broadcast %99 : vector<1x512xf32> to vector<8x512xf32>
    %101 = arith.addf %98, %100 : vector<8x512xf32>
    %102 = vector.broadcast %21 : vector<1x512xf32> to vector<8x512xf32>
    %103 = arith.mulf %101, %102 : vector<8x512xf32>
    %104 = math.tanh %103 : vector<8x512xf32>
    %cst_62 = arith.constant 1.000000e+00 : f32
    %105 = vector.broadcast %cst_62 : f32 to vector<8x512xf32>
    %106 = arith.addf %104, %105 : vector<8x512xf32>
    %cst_63 = arith.constant 5.000000e-01 : f32
    %107 = vector.broadcast %cst_63 : f32 to vector<8x512xf32>
    %108 = arith.mulf %107, %106 : vector<8x512xf32>
    %109 = vector.extract_strided_slice %108 {offsets = [0, 0], sizes = [8, 128], strides = [1, 1]} : vector<8x512xf32> to vector<8x128xf32>
    %110 = vector.extract_strided_slice %108 {offsets = [0, 128], sizes = [8, 128], strides = [1, 1]} : vector<8x512xf32> to vector<8x128xf32>
    %111 = vector.extract_strided_slice %104 {offsets = [0, 256], sizes = [8, 128], strides = [1, 1]} : vector<8x512xf32> to vector<8x128xf32>
    %112 = vector.extract_strided_slice %108 {offsets = [0, 384], sizes = [8, 128], strides = [1, 1]} : vector<8x512xf32> to vector<8x128xf32>
    %113 = arith.mulf %110, %93 : vector<8x128xf32>
    %114 = arith.mulf %109, %111 : vector<8x128xf32>
    %115 = arith.addf %113, %114 : vector<8x128xf32>
    %116 = math.tanh %115 : vector<8x128xf32>
    %117 = arith.mulf %112, %116 : vector<8x128xf32>
    %c2_64 = arith.constant 2 : index
    %c0_65 = arith.constant 0 : index
    %c0_66 = arith.constant 0 : index
    %118 = vector.load %arg17[%c2_64, %c0_65, %c0_66] : memref<3x8x128xf32, #tpu.memory_space<vmem>>, vector<1x8x128xf32>
    %119 = vector.shape_cast %118 : vector<1x8x128xf32> to vector<8x128xf32>
    %120 = vector.shape_cast %117 : vector<8x128xf32> to vector<1x8x128xf32>
    tpu.vector_store %arg17[%c2_64, %c0_65, %c0_66], %120 {strides = array<i32>} : memref<3x8x128xf32, #tpu.memory_space<vmem>>, vector<1x8x128xf32>,
    %c2_67 = arith.constant 2 : index
    %c0_68 = arith.constant 0 : index
    %c0_69 = arith.constant 0 : index
    %121 = vector.load %arg18[%c2_67, %c0_68, %c0_69] : memref<3x8x128xf32, #tpu.memory_space<vmem>>, vector<1x8x128xf32>
    %122 = vector.shape_cast %121 : vector<1x8x128xf32> to vector<8x128xf32>
    %123 = vector.shape_cast %115 : vector<8x128xf32> to vector<1x8x128xf32>
    tpu.vector_store %arg18[%c2_67, %c0_68, %c0_69], %123 {strides = array<i32>} : memref<3x8x128xf32, #tpu.memory_space<vmem>>, vector<1x8x128xf32>,
    %c0_70 = arith.constant 0 : index
    %c0_71 = arith.constant 0 : index
    %124 = vector.load %arg13[%c0_70, %c0_71] : memref<128x128xf32, #tpu.memory_space<vmem>>, vector<128x128xf32>
    %cst_72 = arith.constant dense<0.000000e+00> : vector<8x128xf32>
    %125 = tpu.matmul %117, %124, %cst_72 {dimension_numbers = #tpu.dot_dimension_numbers<[1], [0], [0], [1], [0, 0, 1, 1], [], []>} : vector<8x128xf32>, vector<128x128xf32>, vector<8x128xf32> -> vector<8x128xf32>
    %c0_73 = arith.constant 0 : index
    %c0_74 = arith.constant 0 : index
    %126 = vector.load %arg14[%c0_73, %c0_74] : memref<1x128xf32, #tpu.memory_space<vmem>>, vector<1x128xf32>
    %127 = vector.broadcast %126 : vector<1x128xf32> to vector<8x128xf32>
    %128 = arith.addf %125, %127 : vector<8x128xf32>
    %c0_75 = arith.constant 0 : index
    %c0_76 = arith.constant 0 : index
    %c0_77 = arith.constant 0 : index
    %129 = vector.load %arg15[%c0_75, %c0_76, %c0_77] : memref<1x8x128xf32, #tpu.memory_space<vmem>>, vector<1x8x128xf32>
    %130 = vector.shape_cast %129 : vector<1x8x128xf32> to vector<8x128xf32>
    %131 = vector.shape_cast %128 : vector<8x128xf32> to vector<1x8x128xf32>
    tpu.vector_store %arg15[%c0_75, %c0_76, %c0_77], %131 {strides = array<i32>} : memref<1x8x128xf32, #tpu.memory_space<vmem>>, vector<1x8x128xf32>,
    %c0_i32_78 = arith.constant 0 : i32
    %132 = arith.cmpi eq, %arg0, %c0_i32_78 : i32
    %133 = arith.extui %132 : i1 to i32
    %c0_i32_79 = arith.constant 0 : i32
    %134 = arith.cmpi ne, %133, %c0_i32_79 : i32
    scf.if %134 {
      %c0_80 = arith.constant 0 : index
      %c0_81 = arith.constant 0 : index
      %c0_82 = arith.constant 0 : index
      %135 = vector.load %arg17[%c0_80, %c0_81, %c0_82] : memref<3x8x128xf32, #tpu.memory_space<vmem>>, vector<3x8x128xf32>
      %c0_83 = arith.constant 0 : index
      %c0_84 = arith.constant 0 : index
      %c0_85 = arith.constant 0 : index
      %c0_86 = arith.constant 0 : index
      %136 = vector.load %arg16[%c0_83, %c0_84, %c0_85, %c0_86] : memref<2x3x8x128xf32, #tpu.memory_space<vmem>>, vector<1x3x8x128xf32>
      %137 = vector.shape_cast %136 : vector<1x3x8x128xf32> to vector<3x8x128xf32>
      %138 = vector.shape_cast %135 : vector<3x8x128xf32> to vector<1x3x8x128xf32>
      tpu.vector_store %arg16[%c0_83, %c0_84, %c0_85, %c0_86], %138 {strides = array<i32>} : memref<2x3x8x128xf32, #tpu.memory_space<vmem>>, vector<1x3x8x128xf32>,
      %c0_87 = arith.constant 0 : index
      %c0_88 = arith.constant 0 : index
      %c0_89 = arith.constant 0 : index
      %139 = vector.load %arg18[%c0_87, %c0_88, %c0_89] : memref<3x8x128xf32, #tpu.memory_space<vmem>>, vector<3x8x128xf32>
      %c1_90 = arith.constant 1 : index
      %c0_91 = arith.constant 0 : index
      %c0_92 = arith.constant 0 : index
      %c0_93 = arith.constant 0 : index
      %140 = vector.load %arg16[%c1_90, %c0_91, %c0_92, %c0_93] : memref<2x3x8x128xf32, #tpu.memory_space<vmem>>, vector<1x3x8x128xf32>
      %141 = vector.shape_cast %140 : vector<1x3x8x128xf32> to vector<3x8x128xf32>
      %142 = vector.shape_cast %139 : vector<3x8x128xf32> to vector<1x3x8x128xf32>
      tpu.vector_store %arg16[%c1_90, %c0_91, %c0_92, %c0_93], %142 {strides = array<i32>} : memref<2x3x8x128xf32, #tpu.memory_space<vmem>>, vector<1x3x8x128xf32>,
    } else {
    }
    return
  }
  func.func @transform_0(%arg0: i32) -> (i32, i32, i32) {
    %c0_i32 = arith.constant 0 : i32
    %c0_i32_0 = arith.constant 0 : i32
    %c0_i32_1 = arith.constant 0 : i32
    %c0_i32_2 = arith.constant 0 : i32
    return %c0_i32, %c0_i32_0, %c0_i32_1 : i32, i32, i32
  }
  func.func @transform_1(%arg0: i32) -> (i32, i32) {
    %c0_i32 = arith.constant 0 : i32
    %c0_i32_0 = arith.constant 0 : i32
    %c0_i32_1 = arith.constant 0 : i32
    return %c0_i32, %c0_i32_0 : i32, i32
  }
  func.func @transform_2(%arg0: i32) -> (i32, i32) {
    %c0_i32 = arith.constant 0 : i32
    %c0_i32_0 = arith.constant 0 : i32
    %c0_i32_1 = arith.constant 0 : i32
    return %c0_i32, %c0_i32_0 : i32, i32
  }
  func.func @transform_3(%arg0: i32) -> (i32, i32) {
    %c0_i32 = arith.constant 0 : i32
    %c0_i32_0 = arith.constant 0 : i32
    %c0_i32_1 = arith.constant 0 : i32
    return %c0_i32, %c0_i32_0 : i32, i32
  }
  func.func @transform_4(%arg0: i32) -> (i32, i32) {
    %c0_i32 = arith.constant 0 : i32
    %c0_i32_0 = arith.constant 0 : i32
    %c0_i32_1 = arith.constant 0 : i32
    return %c0_i32, %c0_i32_0 : i32, i32
  }
  func.func @transform_5(%arg0: i32) -> (i32, i32) {
    %c0_i32 = arith.constant 0 : i32
    %c0_i32_0 = arith.constant 0 : i32
    %c0_i32_1 = arith.constant 0 : i32
    return %c0_i32, %c0_i32_0 : i32, i32
  }
  func.func @transform_6(%arg0: i32) -> (i32, i32) {
    %c0_i32 = arith.constant 0 : i32
    %c0_i32_0 = arith.constant 0 : i32
    %c0_i32_1 = arith.constant 0 : i32
    return %c0_i32, %c0_i32_0 : i32, i32
  }
  func.func @transform_7(%arg0: i32) -> (i32, i32) {
    %c0_i32 = arith.constant 0 : i32
    %c0_i32_0 = arith.constant 0 : i32
    %c0_i32_1 = arith.constant 0 : i32
    return %c0_i32, %c0_i32_0 : i32, i32
  }
  func.func @transform_8(%arg0: i32) -> (i32, i32) {
    %c0_i32 = arith.constant 0 : i32
    %c0_i32_0 = arith.constant 0 : i32
    %c0_i32_1 = arith.constant 0 : i32
    return %c0_i32, %c0_i32_0 : i32, i32
  }
  func.func @transform_9(%arg0: i32) -> (i32, i32) {
    %c0_i32 = arith.constant 0 : i32
    %c0_i32_0 = arith.constant 0 : i32
    %c0_i32_1 = arith.constant 0 : i32
    return %c0_i32, %c0_i32_0 : i32, i32
  }
  func.func @transform_10(%arg0: i32) -> (i32, i32) {
    %c0_i32 = arith.constant 0 : i32
    %c0_i32_0 = arith.constant 0 : i32
    %c0_i32_1 = arith.constant 0 : i32
    return %c0_i32, %c0_i32_0 : i32, i32
  }
  func.func @transform_11(%arg0: i32) -> (i32, i32, i32, i32) {
    %c0_i32 = arith.constant 0 : i32
    %c0_i32_0 = arith.constant 0 : i32
    %c0_i32_1 = arith.constant 0 : i32
    %c0_i32_2 = arith.constant 0 : i32
    %c0_i32_3 = arith.constant 0 : i32
    return %c0_i32, %c0_i32_0, %c0_i32_1, %c0_i32_2 : i32, i32, i32, i32
  }
  func.func @transform_12(%arg0: i32) -> (i32, i32) {
    %c0_i32 = arith.constant 0 : i32
    %c0_i32_0 = arith.constant 0 : i32
    %c0_i32_1 = arith.constant 0 : i32
    return %c0_i32, %c0_i32_0 : i32, i32
  }
  func.func @transform_13(%arg0: i32) -> (i32, i32) {
    %c0_i32 = arith.constant 0 : i32
    %c0_i32_0 = arith.constant 0 : i32
    %c0_i32_1 = arith.constant 0 : i32
    return %c0_i32, %c0_i32_0 : i32, i32
  }
  func.func @transform_14(%arg0: i32) -> (i32, i32, i32) {
    %c0_i32 = arith.constant 0 : i32
    %c0_i32_0 = arith.constant 0 : i32
    %c0_i32_1 = arith.constant 0 : i32
    return %arg0, %c0_i32, %c0_i32_0 : i32, i32, i32
  }
  func.func @transform_15(%arg0: i32) -> (i32, i32, i32, i32) {
    %c0_i32 = arith.constant 0 : i32
    %c0_i32_0 = arith.constant 0 : i32
    %c0_i32_1 = arith.constant 0 : i32
    %c0_i32_2 = arith.constant 0 : i32
    %c0_i32_3 = arith.constant 0 : i32
    return %c0_i32, %c0_i32_0, %c0_i32_1, %c0_i32_2 : i32, i32, i32, i32
  }
}

</mosaic_0001>

<bundles_post_ra>
// kernel: _decoder_forward.1
= control target key start
LH: loop header
LB: loop body
LE: loop exit
PB: predicated region body
PF: predicated region fallthrough
CT: control target
= control target key end

     0   :  { %21 = vsyncpa [#allocation5], 0  ;;  %s1750_s0 = inlined_call_operand.vmem [shape: s32[1,8,1], index: 0, kind: input, shape index: {}]   ;;  %s1751_s1 = inlined_call_operand.vmem [shape: f32[128,64], index: 1, kind: input, shape index: {}]   ;;  %s1752_s2 = inlined_call_operand.hbm [shape: f32[64,512], index: 2, kind: input, shape index: {}]   ;;  %s1753_s3 = inlined_call_operand.hbm [shape: f32[128,512], index: 3, kind: input, shape index: {}]   ;;  %s1754_s4 = inlined_call_operand.hbm [shape: f32[128,512], index: 4, kind: input, shape index: {}]   ;;  %s1755_s5 = inlined_call_operand.hbm [shape: f32[128,512], index: 5, kind: input, shape index: {}]   ;;  %s1756_s6 = inlined_call_operand.hbm [shape: f32[128,512], index: 6, kind: input, shape index: {}]   ;;  %s1757_s7 = inlined_call_operand.hbm [shape: f32[128,512], index: 7, kind: input, shape index: {}]   ;;  %s1758_s8 = inlined_call_operand.vmem [shape: f32[1,512], index: 8, kind: input, shape index: {}]   ;;  %s1759_s9 = inlined_call_operand.vmem [shape: f32[1,512], index: 9, kind: input, shape index: {}]   ;;  %s1760_s10 = inlined_call_operand.vmem [shape: f32[1,512], index: 10, kind: input, shape index: {}]   ;;  %s1761_s11 = inlined_call_operand.vmem [shape: f32[2,3,8,128], index: 11, kind: input, shape index: {}]   ;;  %s1762_s12 = inlined_call_operand.vmem [shape: f32[128,128], index: 12, kind: input, shape index: {}]   ;;  %s1763_s13 = inlined_call_operand.vmem [shape: f32[1,128], index: 13, kind: input, shape index: {}]   ;;  %s1764_s14 = inlined_call_operand.vmem [shape: f32[1,8,128], index: 14, kind: output, shape index: {0}]   ;;  %s1765_s15 = inlined_call_operand.vmem [shape: f32[2,3,8,128], index: 15, kind: output, shape index: {1}]  }
   0x1   :  { %22 = vsyncpa [#allocation7], 0 }
   0x2   :  { %23 = vsyncpa [#allocation10], 0 }
   0x3   :  { %24 = vsyncpa [#allocation13], 0  ;;  %s46_s20 = sshll.u32 %s1753_s3, 4  ;;  %s1452_s21 = smov [#allocation6]   ;;  %s47_s20 = int_to_ptr.hbm [resolvable:$true] %s46_s20 }
   0x4   :  { %s48_s22 = sshll.u32 %s1452_s21, 4  ;;  %s72_s25 = sshll.u32 %s1755_s5, 4  ;;  %s49_s22 = int_to_ptr.vmem [resolvable:$true] %s48_s22  ;;  %s73_s25 = int_to_ptr.hbm [resolvable:$true] %s72_s25 }
   0x5   :  { %s1453_s26 = smov 512   ;;  %s1454_s27 = smov 32  }
   0x6   :  { %54 = dma.hbm_to_vmem [thread:$0]  %s47_s20, 8192, %s49_s22, [#allocation7], %s1453_s26, %s1453_s26, %s1454_s27  }
   0x7   :  { %s1455_s28 = smov [#allocation9]   ;;  %s33_s3 = sshll.u32 %s1752_s2, 4  ;;  %s34_s3 = int_to_ptr.hbm [resolvable:$true] %s33_s3 }
   0x8   :  { %s74_s29 = sshll.u32 %s1455_s28, 4  ;;  %s59_s18 = sshll.u32 %s1754_s4, 4  ;;  %s75_s29 = int_to_ptr.vmem [resolvable:$true] %s74_s29  ;;  %s60_s18 = int_to_ptr.hbm [resolvable:$true] %s59_s18 }
   0x9   :  { %80 = dma.hbm_to_vmem [thread:$0]  %s73_s25, 8192, %s75_s29, [#allocation10], %s1453_s26, %s1453_s26, %s1454_s27  }
   0xa   :  { %s1456_s19 = smov [#allocation4]   ;;  %s1457_s20 = smov [#allocation8]  }
   0xb   :  { %s35_s21 = sshll.u32 %s1456_s19, 4  ;;  %s61_s2 = sshll.u32 %s1457_s20, 4  ;;  %s36_s21 = int_to_ptr.vmem [resolvable:$true] %s35_s21  ;;  %s62_s2 = int_to_ptr.vmem [resolvable:$true] %s61_s2 }
   0xc   :  { %41 = dma.hbm_to_vmem [thread:$0]  %s34_s3, 4096, %s36_s21, [#allocation5], %s1453_s26, %s1453_s26, %s1454_s27  }
   0xd   :  { %s85_s24 = sshll.u32 %s1756_s6, 4  ;;  %s98_s28 = sshll.u32 %s1757_s7, 4  ;;  %s86_s24 = int_to_ptr.hbm [resolvable:$true] %s85_s24  ;;  %s99_s28 = int_to_ptr.hbm [resolvable:$true] %s98_s28 }
   0xe   :  { %67 = dma.hbm_to_vmem [thread:$0]  %s60_s18, 8192, %s62_s2, [#allocation7], %s1453_s26, %s1453_s26, %s1454_s27  }
   0xf   :  { %s1458_s29 = smov [#allocation11]   ;;  %s1459_s16 = smov [#allocation12]  }
  0x10   :  { %s87_s30 = sshll.u32 %s1458_s29, 4  ;;  %s100_s6 = sshll.u32 %s1459_s16, 4  ;;  %s88_s30 = int_to_ptr.vmem [resolvable:$true] %s87_s30  ;;  %s101_s6 = int_to_ptr.vmem [resolvable:$true] %s100_s6 }
  0x11   :  { %93 = dma.hbm_to_vmem [thread:$0]  %s86_s24, 8192, %s88_s30, [#allocation10], %s1453_s26, %s1453_s26, %s1454_s27  }
  0x12   :  { %106 = dma.hbm_to_vmem [thread:$0]  %s99_s28, 8192, %s101_s6, [#allocation13], %s1453_s26, %s1453_s26, %s1454_s27  }
  0x13   :  { %1444 = dma.done.wait [#allocation5], 4096  }
  0x14   :  { %1445 = vsyncadd [#allocation5], 4294963200 }
  0x15   :  { %1446 = dma.done.wait [#allocation7], 16384  }
  0x16   :  { %1447 = vsyncadd [#allocation7], 4294950912 }
  0x17   :  { %1448 = dma.done.wait [#allocation10], 16384  }
  0x18   :  { %1449 = vsyncadd [#allocation10], 4294950912 }
  0x19   :  { %1450 = dma.done.wait [#allocation13], 8192  }
  0x1a   :  { %1451 = vsyncadd [#allocation13], 4294959104  ;;  %v1460_v0 = vmov 0   ;;  %v162_v1 = vld [vmem:[%s1750_s0] sm:$0xff]  ;;  %v186_v2 = vld [vmem:[%s1751_s1 + $0x78] sm:$0xff]  ;;  %v163_v59 = vlaneseq  ;;  %vm404_vm1 = vcmask 523264  }
  0x1b   :  { %1268 = vset.pattern.permute.xlu0 %v1460_v0  ;;  %v185_v3 = vld [vmem:[%s1751_s1 + $0x70] sm:$0xff]  ;;  %187 = vmatpush.msra.mxu0 %v186_v2  ;;  %v184_v4 = vld [vmem:[%s1751_s1 + $0x68] sm:$0xff]  ;;  %v183_v5 = vld [vmem:[%s1751_s1 + $0x60] sm:$0xff] }
  0x1c   :  { %166 = vperm.xlu0 %1268, %v162_v1   ;;  %v182_v6 = vld [vmem:[%s1751_s1 + $0x58] sm:$0xff]  ;;  %v181_v7 = vld [vmem:[%s1751_s1 + $0x50] sm:$0xff]  ;;  %v180_v8 = vld [vmem:[%s1751_s1 + $0x48] sm:$0xff] }
  0x1d   :  { %188 = vmatpush.msra.mxu0 %v185_v3  ;;  %v179_v9 = vld [vmem:[%s1751_s1 + $0x40] sm:$0xff]  ;;  %v178_v10 = vld [vmem:[%s1751_s1 + $0x38] sm:$0xff]  ;;  %v177_v11 = vld [vmem:[%s1751_s1 + $0x30] sm:$0xff] }
  0x1e   :  { %v176_v12 = vld [vmem:[%s1751_s1 + $0x28] sm:$0xff]  ;;  %v175_v13 = vld [vmem:[%s1751_s1 + $0x20] sm:$0xff]  ;;  %v174_v14 = vld [vmem:[%s1751_s1 + $0x18] sm:$0xff] }
  0x1f   :  { %189 = vmatpush.msra.mxu0 %v184_v4  ;;  %v173_v15 = vld [vmem:[%s1751_s1 + $0x10] sm:$0xff]  ;;  %v172_v16 = vld [vmem:[%s1751_s1 + $0x8] sm:$0xff]  ;;  %v171_v17 = vld [vmem:[%s1751_s1] sm:$0xff]  ;;  %v164_v4 = vand.u32 127, %v163_v59 }
  0x20   :  { %v320_v18 = vld [vmem:[#allocation9 + $0x1e0] sm:$0xff]  ;;  %v322_v19 = vld [vmem:[#allocation9 + $0x1f0] sm:$0xff]  ;;  %v321_v28 = vld [vmem:[#allocation9 + $0x1e8] sm:$0xff] }
  0x21   :  { %190 = vmatpush.msra.mxu0 %v183_v5  ;;  %v316_v20 = vld [vmem:[#allocation9 + $0x1c0] sm:$0xff]  ;;  %324 = vmatpush.msra.mxu1 %v320_v18  ;;  %v318_v21 = vld [vmem:[#allocation9 + $0x1d0] sm:$0xff]  ;;  %v317_v31 = vld [vmem:[#allocation9 + $0x1c8] sm:$0xff] }
  0x22   :  { %364 = vmatpush.msra.mxu3 %v322_v19  ;;  %v312_v22 = vld [vmem:[#allocation9 + $0x1a0] sm:$0xff]  ;;  %v314_v23 = vld [vmem:[#allocation9 + $0x1b0] sm:$0xff]  ;;  %344 = vmatpush.msra.mxu2 %v321_v28  ;;  %v313_v32 = vld [vmem:[#allocation9 + $0x1a8] sm:$0xff] }
  0x23   :  { %191 = vmatpush.msra.mxu0 %v182_v6  ;;  %325 = vmatpush.msra.mxu1 %v316_v20  ;;  %v308_v24 = vld [vmem:[#allocation9 + $0x180] sm:$0xff]  ;;  %v310_v25 = vld [vmem:[#allocation9 + $0x190] sm:$0xff]  ;;  %v309_v35 = vld [vmem:[#allocation9 + $0x188] sm:$0xff] }
  0x24   :  { %365 = vmatpush.msra.mxu3 %v318_v21  ;;  %v304_v26 = vld [vmem:[#allocation9 + $0x160] sm:$0xff]  ;;  %v306_v27 = vld [vmem:[#allocation9 + $0x170] sm:$0xff]  ;;  %345 = vmatpush.msra.mxu2 %v317_v31  ;;  %v323_v38 = vld [vmem:[#allocation9 + $0x1f8] sm:$0xff] }
  0x25   :  { %192 = vmatpush.msra.mxu0 %v181_v7  ;;  %326 = vmatpush.msra.mxu1 %v312_v22  ;;  %v300_v29 = vld [vmem:[#allocation9 + $0x140] sm:$0xff]  ;;  %v302_v30 = vld [vmem:[#allocation9 + $0x150] sm:$0xff]  ;;  %v305_v39 = vld [vmem:[#allocation9 + $0x168] sm:$0xff] }
  0x26   :  { %366 = vmatpush.msra.mxu3 %v314_v23  ;;  %v296_v33 = vld [vmem:[#allocation9 + $0x120] sm:$0xff]  ;;  %v298_v34 = vld [vmem:[#allocation9 + $0x130] sm:$0xff]  ;;  %346 = vmatpush.msra.mxu2 %v313_v32  ;;  %v319_v40 = vld [vmem:[#allocation9 + $0x1d8] sm:$0xff] }
  0x27   :  { %193 = vmatpush.msra.mxu0 %v180_v8  ;;  %327 = vmatpush.msra.mxu1 %v308_v24  ;;  %v292_v36 = vld [vmem:[#allocation9 + $0x100] sm:$0xff]  ;;  %v294_v37 = vld [vmem:[#allocation9 + $0x110] sm:$0xff]  ;;  %v301_v43 = vld [vmem:[#allocation9 + $0x148] sm:$0xff] }
  0x28   :  { %367 = vmatpush.msra.mxu3 %v310_v25  ;;  %v288_v41 = vld [vmem:[#allocation9 + $0xe0] sm:$0xff]  ;;  %v290_v42 = vld [vmem:[#allocation9 + $0xf0] sm:$0xff]  ;;  %347 = vmatpush.msra.mxu2 %v309_v35  ;;  %v315_v44 = vld [vmem:[#allocation9 + $0x1b8] sm:$0xff] }
  0x29   :  { %194 = vmatpush.msra.mxu0 %v179_v9  ;;  %328 = vmatpush.msra.mxu1 %v304_v26  ;;  %v284_v45 = vld [vmem:[#allocation9 + $0xc0] sm:$0xff]  ;;  %v286_v46 = vld [vmem:[#allocation9 + $0xd0] sm:$0xff]  ;;  %v297_v47 = vld [vmem:[#allocation9 + $0x128] sm:$0xff] }
  0x2a   :  { %368 = vmatpush.msra.mxu3 %v306_v27  ;;  %348 = vmatpush.msra.mxu2 %v305_v39  ;;  %v311_v48 = vld [vmem:[#allocation9 + $0x198] sm:$0xff]  ;;  %v280_v49 = vld [vmem:[#allocation9 + $0xa0] sm:$0xff]  ;;  %v282_v50 = vld [vmem:[#allocation9 + $0xb0] sm:$0xff] }
  0x2b   :  { %195 = vmatpush.msra.mxu0 %v178_v10  ;;  %329 = vmatpush.msra.mxu1 %v300_v29  ;;  %v293_v51 = vld [vmem:[#allocation9 + $0x108] sm:$0xff]  ;;  %v307_v52 = vld [vmem:[#allocation9 + $0x178] sm:$0xff]  ;;  %v276_v53 = vld [vmem:[#allocation9 + $0x80] sm:$0xff] }
  0x2c   :  { %369 = vmatpush.msra.mxu3 %v302_v30  ;;  %349 = vmatpush.msra.mxu2 %v301_v43  ;;  %v278_v54 = vld [vmem:[#allocation9 + $0x90] sm:$0xff]  ;;  %v289_v55 = vld [vmem:[#allocation9 + $0xe8] sm:$0xff]  ;;  %v303_v56 = vld [vmem:[#allocation9 + $0x158] sm:$0xff] }
  0x2d   :  { %196 = vmatpush.msra.mxu0 %v177_v11  ;;  %330 = vmatpush.msra.mxu1 %v296_v33  ;;  %v272_v57 = vld [vmem:[#allocation9 + $0x60] sm:$0xff]  ;;  %v274_v58 = vld [vmem:[#allocation9 + $0x70] sm:$0xff]  ;;  %v285_v60 = vld [vmem:[#allocation9 + $0xc8] sm:$0xff] }
  0x2e   :  { %370 = vmatpush.msra.mxu3 %v298_v34  ;;  %350 = vmatpush.msra.mxu2 %v297_v47  ;;  %v299_v61 = vld [vmem:[#allocation9 + $0x138] sm:$0xff]  ;;  %v268_v62 = vld [vmem:[#allocation9 + $0x40] sm:$0xff]  ;;  %v270_v63 = vld [vmem:[#allocation9 + $0x50] sm:$0xff] }
  0x2f   :  { %197 = vmatpush.msra.mxu0 %v176_v12  ;;  %331 = vmatpush.msra.mxu1 %v292_v36  ;;  %v281_v0 = vld [vmem:[#allocation9 + $0xa8] sm:$0xff]  ;;  %v295_v1 = vld [vmem:[#allocation9 + $0x118] sm:$0xff]  ;;  %v264_v2 = vld [vmem:[#allocation9 + $0x20] sm:$0xff] }
  0x30   :  { %371 = vmatpush.msra.mxu3 %v294_v37  ;;  %351 = vmatpush.msra.mxu2 %v293_v51  ;;  %v266_v3 = vld [vmem:[#allocation9 + $0x30] sm:$0xff]  ;;  %v277_v5 = vld [vmem:[#allocation9 + $0x88] sm:$0xff]  ;;  %v291_v6 = vld [vmem:[#allocation9 + $0xf8] sm:$0xff] }
  0x31   :  { %198 = vmatpush.msra.mxu0 %v175_v13  ;;  %332 = vmatpush.msra.mxu1 %v288_v41  ;;  %v260_v7 = vld [vmem:[#allocation9] sm:$0xff]  ;;  %v262_v8 = vld [vmem:[#allocation9 + $0x10] sm:$0xff]  ;;  %v257_v11 = vld [vmem:[#allocation4 + $0xe8] sm:$0xff] }
  0x32   :  { %372 = vmatpush.msra.mxu3 %v290_v42  ;;  %352 = vmatpush.msra.mxu2 %v289_v55  ;;  %v256_v9 = vld [vmem:[#allocation4 + $0xe0] sm:$0xff]  ;;  %v287_v18 = vld [vmem:[#allocation9 + $0xd8] sm:$0xff]  ;;  %v249_v19 = vld [vmem:[#allocation4 + $0xa8] sm:$0xff] }
  0x33   :  { %199 = vmatpush.msra.mxu0 %v174_v14  ;;  %333 = vmatpush.msra.mxu1 %v284_v45  ;;  %v1632_v12 = vld [vmem:[%s1761_s11] sm:$0xff]  ;;  %v1461_v14 = vmov 1.0   ;;  %v269_v20 = vld [vmem:[#allocation9 + $0x48] sm:$0xff]  ;;  %v283_v22 = vld [vmem:[#allocation9 + $0xb8] sm:$0xff] }
  0x34   :  { %373 = vmatpush.msra.mxu3 %v286_v46  ;;  %353 = vmatpush.msra.mxu2 %v285_v60  ;;  %v252_v13 = vld [vmem:[#allocation4 + $0xc0] sm:$0xff]  ;;  %v245_v23 = vld [vmem:[#allocation4 + $0x88] sm:$0xff]  ;;  %v259_v33 = vld [vmem:[#allocation4 + $0xf8] sm:$0xff] }
  0x35   :  { %200 = vmatpush.msra.mxu0 %v173_v15  ;;  %334 = vmatpush.msra.mxu1 %v280_v49  ;;  %v253_v15 = vld [vmem:[#allocation4 + $0xc8] sm:$0xff]  ;;  %v244_v21 = vld [vmem:[#allocation4 + $0x80] sm:$0xff]  ;;  %v258_v34 = vld [vmem:[#allocation4 + $0xf0] sm:$0xff] }
  0x36   :  { %374 = vmatpush.msra.mxu3 %v282_v50  ;;  %354 = vmatpush.msra.mxu2 %v281_v0  ;;  %v265_v24 = vld [vmem:[#allocation9 + $0x28] sm:$0xff]  ;;  %v240_v25 = vld [vmem:[#allocation4 + $0x60] sm:$0xff]  ;;  %v255_v35 = vld [vmem:[#allocation4 + $0xd8] sm:$0xff] }
  0x37   :  { %201 = vmatpush.msra.mxu0 %v172_v16  ;;  %335 = vmatpush.msra.mxu1 %v276_v53  ;;  %v273_v16 = vld [vmem:[#allocation9 + $0x68] sm:$0xff]  ;;  %v236_v27 = vld [vmem:[#allocation4 + $0x40] sm:$0xff]  ;;  %v254_v36 = vld [vmem:[#allocation4 + $0xd0] sm:$0xff] }
  0x38   :  { %375 = vmatpush.msra.mxu3 %v278_v54  ;;  %355 = vmatpush.msra.mxu2 %v277_v5  ;;  %v241_v26 = vld [vmem:[#allocation4 + $0x68] sm:$0xff]  ;;  %v232_v29 = vld [vmem:[#allocation4 + $0x20] sm:$0xff]  ;;  %v251_v37 = vld [vmem:[#allocation4 + $0xb8] sm:$0xff] }
  0x39   :  { %202 = vmatpush.msra.mxu0 %v171_v17  ;;  %336 = vmatpush.msra.mxu1 %v272_v57  ;;  %v248_v17 = vld [vmem:[#allocation4 + $0xa0] sm:$0xff]  ;;  %v237_v28 = vld [vmem:[#allocation4 + $0x48] sm:$0xff]  ;;  %v246_v41 = vld [vmem:[#allocation4 + $0x90] sm:$0xff] }
  0x3a   :  { %376 = vmatpush.msra.mxu3 %v274_v58  ;;  %356 = vmatpush.msra.mxu2 %v273_v16  ;;  %v233_v30 = vld [vmem:[#allocation4 + $0x28] sm:$0xff]  ;;  %v228_v31 = vld [vmem:[#allocation4] sm:$0xff]  ;;  %v247_v42 = vld [vmem:[#allocation4 + $0x98] sm:$0xff] }
  0x3b   :  { %384 = vmatpush.msrb.mxu0 %v323_v38  ;;  %337 = vmatpush.msra.mxu1 %v268_v62  ;;  %v229_v32 = vld [vmem:[#allocation4 + $0x8] sm:$0xff]  ;;  %v250_v38 = vld [vmem:[#allocation4 + $0xb0] sm:$0xff]  ;;  %v275_v43 = vld [vmem:[#allocation9 + $0x78] sm:$0xff] }
  0x3c   :  { %377 = vmatpush.msra.mxu3 %v270_v63  ;;  %357 = vmatpush.msra.mxu2 %v269_v20  ;;  %v261_v39 = vld [vmem:[#allocation9 + $0x8] sm:$0xff]  ;;  %v243_v45 = vld [vmem:[#allocation4 + $0x78] sm:$0xff]  ;;  %v238_v47 = vld [vmem:[#allocation4 + $0x50] sm:$0xff] }
  0x3d   :  { %385 = vmatpush.msrb.mxu0 %v319_v40  ;;  %338 = vmatpush.msra.mxu1 %v264_v2  ;;  %v279_v40 = vld [vmem:[#allocation9 + $0x98] sm:$0xff]  ;;  %v234_v50 = vld [vmem:[#allocation4 + $0x30] sm:$0xff]  ;;  %v651_v55 = vld [vmem:[#allocation11 + $0x1e0] sm:$0xff] }
  0x3e   :  { %378 = vmatpush.msra.mxu3 %v266_v3  ;;  %358 = vmatpush.msra.mxu2 %v265_v24  ;;  %v271_v46 = vld [vmem:[#allocation9 + $0x58] sm:$0xff]  ;;  %v230_v53 = vld [vmem:[#allocation4 + $0x10] sm:$0xff]  ;;  %v647_v57 = vld [vmem:[#allocation11 + $0x1c0] sm:$0xff] }
  0x3f   :  { %386 = vmatpush.msrb.mxu0 %v315_v44  ;;  %339 = vmatpush.msra.mxu1 %v260_v7  ;;  %v242_v44 = vld [vmem:[#allocation4 + $0x70] sm:$0xff]  ;;  %v267_v49 = vld [vmem:[#allocation9 + $0x38] sm:$0xff]  ;;  %v643_v59 = vld [vmem:[#allocation11 + $0x1a0] sm:$0xff] }
  0x40   :  { %379 = vmatpush.msra.mxu3 %v262_v8  ;;  %340 = vmatmul.f32.vlgmr.msra.gmra.mxu1 %v1632_v12  ;;  %v235_v51 = vld [vmem:[#allocation4 + $0x38] sm:$0xff]  ;;  %v649_v58 = vld [vmem:[#allocation11 + $0x1d0] sm:$0xff]  ;;  %v635_v63 = vld [vmem:[#allocation11 + $0x160] sm:$0xff] }
  0x41   :  { %387 = vmatpush.msrb.mxu0 %v311_v48  ;;  %416 = vmatpush.msrb.mxu1 %v256_v9  ;;  %v239_v48 = vld [vmem:[#allocation4 + $0x58] sm:$0xff]  ;;  %v645_v60 = vld [vmem:[#allocation11 + $0x1b0] sm:$0xff]  ;;  %v627_v3 = vld [vmem:[#allocation11 + $0x120] sm:$0xff] }
  0x42   :  { %436 = vmatpush.msrb.mxu3 %v257_v11  ;;  %359 = vmatpush.msra.mxu2 %v261_v39  ;;  %v231_v54 = vld [vmem:[#allocation4 + $0x18] sm:$0xff]  ;;  %v641_v62 = vld [vmem:[#allocation11 + $0x190] sm:$0xff]  ;;  %v623_v5 = vld [vmem:[#allocation11 + $0x100] sm:$0xff] }
  0x43   :  { %388 = vmatpush.msrb.mxu0 %v307_v52  ;;  %417 = vmatpush.msrb.mxu1 %v252_v13  ;;  %v263_v52 = vld [vmem:[#allocation9 + $0x18] sm:$0xff]  ;;  %v637_v0 = vld [vmem:[#allocation11 + $0x170] sm:$0xff]  ;;  %v619_v7 = vld [vmem:[#allocation11 + $0xe0] sm:$0xff] }
  0x44   :  { %380 = vmatmul.f32.vlgmr.msra.gmra.mxu3 %v1632_v12  ;;  %360 = vmatmul.f32.vlgmr.msra.gmra.mxu2 %v1632_v12  ;;  %v633_v2 = vld [vmem:[#allocation11 + $0x150] sm:$0xff]  ;;  %v615_v9 = vld [vmem:[#allocation11 + $0xc0] sm:$0xff]  ;;  %v644_v20 = vld [vmem:[#allocation11 + $0x1a8] sm:$0xff] }
  0x45   :  { %389 = vmatpush.msrb.mxu0 %v303_v56  ;;  %437 = vmatpush.msrb.mxu3 %v253_v15  ;;  %v653_v56 = vld [vmem:[#allocation11 + $0x1f0] sm:$0xff]  ;;  %v611_v11 = vld [vmem:[#allocation11 + $0xa0] sm:$0xff]  ;;  %v654_v15 = vld [vmem:[#allocation11 + $0x1f8] sm:$0xff] }
  0x46   :  { %418 = vmatpush.msrb.mxu1 %v248_v17  ;;  %655 = vmatpush.msrb.mxu2 %v651_v55  ;;  %v621_v8 = vld [vmem:[#allocation11 + $0xf0] sm:$0xff]  ;;  %v607_v13 = vld [vmem:[#allocation11 + $0x80] sm:$0xff]  ;;  %v636_v24 = vld [vmem:[#allocation11 + $0x168] sm:$0xff] }
  0x47   :  { %390 = vmatpush.msrb.mxu0 %v299_v61  ;;  %438 = vmatpush.msrb.mxu3 %v249_v19  ;;  %v639_v61 = vld [vmem:[#allocation11 + $0x180] sm:$0xff]  ;;  %v609_v17 = vld [vmem:[#allocation11 + $0x90] sm:$0xff]  ;;  %v650_v19 = vld [vmem:[#allocation11 + $0x1d8] sm:$0xff] }
  0x48   :  { %419 = vmatpush.msrb.mxu1 %v244_v21  ;;  %656 = vmatpush.msrb.mxu2 %v647_v57  ;;  %v646_v21 = vld [vmem:[#allocation11 + $0x1b8] sm:$0xff]  ;;  %v588_v57 = vld [vmem:[#allocation6 + $0x1e8] sm:$0xff] }
  0x49   :  { %391 = vmatpush.msrb.mxu0 %v295_v1  ;;  %439 = vmatpush.msrb.mxu3 %v245_v23  ;;  %v631_v1 = vld [vmem:[#allocation11 + $0x140] sm:$0xff]  ;;  %v642_v23 = vld [vmem:[#allocation11 + $0x198] sm:$0xff] }
  0x4a   :  { %420 = vmatpush.msrb.mxu1 %v240_v25  ;;  %657 = vmatpush.msrb.mxu2 %v643_v59  ;;  %v638_v25 = vld [vmem:[#allocation11 + $0x178] sm:$0xff] }
  0x4b   :  { %392 = vmatpush.msrb.mxu0 %v291_v6  ;;  %440 = vmatpush.msrb.mxu3 %v241_v26  ;;  %v625_v6 = vld [vmem:[#allocation11 + $0x110] sm:$0xff]  ;;  %v632_v26 = vld [vmem:[#allocation11 + $0x148] sm:$0xff]  ;;  %v610_v39 = vld [vmem:[#allocation11 + $0x98] sm:$0xff] }
  0x4c   :  { %421 = vmatpush.msrb.mxu1 %v236_v27  ;;  %658 = vmatpush.msrb.mxu2 %v639_v61  ;;  %v634_v27 = vld [vmem:[#allocation11 + $0x158] sm:$0xff]  ;;  %v584_v61 = vld [vmem:[#allocation6 + $0x1c8] sm:$0xff] }
  0x4d   :  { %393 = vmatpush.msrb.mxu0 %v287_v18  ;;  %441 = vmatpush.msrb.mxu3 %v237_v28  ;;  %v648_v18 = vld [vmem:[#allocation11 + $0x1c8] sm:$0xff]  ;;  %v594_v55 = vld [vmem:[#allocation11 + $0x18] sm:$0xff] }
  0x4e   :  { %422 = vmatpush.msrb.mxu1 %v232_v29  ;;  %659 = vmatpush.msrb.mxu2 %v635_v63  ;;  %v628_v28 = vld [vmem:[#allocation11 + $0x128] sm:$0xff]  ;;  %v630_v29 = vld [vmem:[#allocation11 + $0x138] sm:$0xff] }
  0x4f   :  { %394 = vmatpush.msrb.mxu0 %v283_v22  ;;  %442 = vmatpush.msrb.mxu3 %v233_v30  ;;  %v640_v22 = vld [vmem:[#allocation11 + $0x188] sm:$0xff]  ;;  %v590_v59 = vld [vmem:[#allocation6 + $0x1f8] sm:$0xff] }
  0x50   :  { %423 = vmatpush.msrb.mxu1 %v228_v31  ;;  %660 = vmatpush.msrb.mxu2 %v631_v1  ;;  %v624_v30 = vld [vmem:[#allocation11 + $0x108] sm:$0xff]  ;;  %v626_v31 = vld [vmem:[#allocation11 + $0x118] sm:$0xff] }
  0x51   :  { %443 = vmatpush.msrb.mxu3 %v229_v32  ;;  %395 = vmatpush.msrb.mxu0 %v279_v40  ;;  %v620_v32 = vld [vmem:[#allocation11 + $0xe8] sm:$0xff]  ;;  %v603_v40 = vld [vmem:[#allocation11 + $0x60] sm:$0xff]  ;;  %v586_v63 = vld [vmem:[#allocation6 + $0x1d8] sm:$0xff] }
  0x52   :  { %476 = vmatpush.msra.mxu1 %v259_v33  ;;  %661 = vmatpush.msrb.mxu2 %v627_v3  ;;  %v622_v33 = vld [vmem:[#allocation11 + $0xf8] sm:$0xff]  ;;  %v580_v1 = vld [vmem:[#allocation6 + $0x1a8] sm:$0xff] }
  0x53   :  { %456 = vmatpush.msra.mxu3 %v258_v34  ;;  %396 = vmatpush.msrb.mxu0 %v275_v43  ;;  %v616_v34 = vld [vmem:[#allocation11 + $0xc8] sm:$0xff]  ;;  %v606_v43 = vld [vmem:[#allocation11 + $0x78] sm:$0xff] }
  0x54   :  { %477 = vmatpush.msra.mxu1 %v255_v35  ;;  %662 = vmatpush.msrb.mxu2 %v623_v5  ;;  %v618_v35 = vld [vmem:[#allocation11 + $0xd8] sm:$0xff]  ;;  %v576_v5 = vld [vmem:[#allocation6 + $0x188] sm:$0xff] }
  0x55   :  { %457 = vmatpush.msra.mxu3 %v254_v36  ;;  %397 = vmatpush.msrb.mxu0 %v271_v46  ;;  %v612_v36 = vld [vmem:[#allocation11 + $0xa8] sm:$0xff]  ;;  %v601_v46 = vld [vmem:[#allocation11 + $0x50] sm:$0xff]  ;;  %v582_v3 = vld [vmem:[#allocation6 + $0x1b8] sm:$0xff] }
  0x56   :  { %478 = vmatpush.msra.mxu1 %v251_v37  ;;  %663 = vmatpush.msrb.mxu2 %v619_v7  ;;  %v614_v37 = vld [vmem:[#allocation11 + $0xb8] sm:$0xff] }
  0x57   :  { %458 = vmatpush.msra.mxu3 %v250_v38  ;;  %398 = vmatpush.msrb.mxu0 %v267_v49  ;;  %v608_v38 = vld [vmem:[#allocation11 + $0x88] sm:$0xff]  ;;  %v578_v7 = vld [vmem:[#allocation6 + $0x198] sm:$0xff] }
  0x58   :  { %479 = vmatpush.msra.mxu1 %v247_v42  ;;  %664 = vmatpush.msrb.mxu2 %v615_v9  ;;  %v605_v42 = vld [vmem:[#allocation11 + $0x70] sm:$0xff]  ;;  %v596_v49 = vld [vmem:[#allocation11 + $0x28] sm:$0xff] }
  0x59   :  { %459 = vmatpush.msra.mxu3 %v246_v41  ;;  %399 = vmatpush.msrb.mxu0 %v263_v52  ;;  %v604_v41 = vld [vmem:[#allocation11 + $0x68] sm:$0xff]  ;;  %v591_v52 = vld [vmem:[#allocation11] sm:$0xff] }
  0x5a   :  { %480 = vmatpush.msra.mxu1 %v243_v45  ;;  %665 = vmatpush.msrb.mxu2 %v611_v11  ;;  %v600_v45 = vld [vmem:[#allocation11 + $0x48] sm:$0xff]  ;;  %v574_v11 = vld [vmem:[#allocation6 + $0x178] sm:$0xff] }
  0x5b   :  { %460 = vmatpush.msra.mxu3 %v242_v44  ;;  %v599_v44 = vld [vmem:[#allocation11 + $0x40] sm:$0xff]  ;;  %v572_v9 = vld [vmem:[#allocation6 + $0x168] sm:$0xff] }
  0x5c   :  { %481 = vmatpush.msra.mxu1 %v239_v48  ;;  %666 = vmatpush.msrb.mxu2 %v607_v13  ;;  %v595_v48 = vld [vmem:[#allocation11 + $0x20] sm:$0xff]  ;;  %v568_v13 = vld [vmem:[#allocation6 + $0x148] sm:$0xff] }
  0x5d   :  { %461 = vmatpush.msra.mxu3 %v238_v47  ;;  %v602_v47 = vld [vmem:[#allocation11 + $0x58] sm:$0xff] }
  0x5e   :  { %482 = vmatpush.msra.mxu1 %v235_v51  ;;  %667 = vmatpush.msrb.mxu2 %v603_v40  ;;  %v598_v51 = vld [vmem:[#allocation11 + $0x38] sm:$0xff]  ;;  %v544_v40 = vld [vmem:[#allocation6 + $0x88] sm:$0xff] }
  0x5f   :  { %462 = vmatpush.msra.mxu3 %v234_v50  ;;  %v597_v50 = vld [vmem:[#allocation11 + $0x30] sm:$0xff] }
  0x60   :  { %483 = vmatpush.msra.mxu1 %v231_v54  ;;  %668 = vmatpush.msrb.mxu2 %v599_v44  ;;  %v593_v54 = vld [vmem:[#allocation11 + $0x10] sm:$0xff] }
  0x61   :  { %463 = vmatpush.msra.mxu3 %v230_v53  ;;  %v592_v53 = vld [vmem:[#allocation11 + $0x8] sm:$0xff] }
  0x62   :  { %669 = vmatpush.msrb.mxu2 %v595_v48 }
  0x64   :  { %670 = vmatpush.msrb.mxu2 %v591_v52  ;;  %v536_v52 = vld [vmem:[#allocation6 + $0x48] sm:$0xff] }
  0x8e   :  { %v167_v10 = vpop.permute.xlu0 %166 }
  0x8f   :  { %vm168_vm0 = vcmp.eq.s32.totalorder %v167_v10, %v164_v4  ;;  %v629_v4 = vld [vmem:[#allocation11 + $0x130] sm:$0xff] }
  0x90   :  { %1250 = vmatmul.msk.f32.vlgmr.msra.gmra.mxu0 %vm168_vm0, %v1461_v14  ;;  %v617_v10 = vld [vmem:[#allocation11 + $0xd0] sm:$0xff]  ;;  %v652_v14 = vld [vmem:[#allocation11 + $0x1e8] sm:$0xff] }
  0x91   :  { %695 = vmatpush.msra.mxu0 %v653_v56  ;;  %v587_v56 = vld [vmem:[#allocation6 + $0x1e0] sm:$0xff] }
  0x92   :  { %735 = vmatpush.msra.mxu2 %v587_v56 }
  0x93   :  { %696 = vmatpush.msra.mxu0 %v649_v58  ;;  %v589_v58 = vld [vmem:[#allocation6 + $0x1f0] sm:$0xff] }
  0x95   :  { %697 = vmatpush.msra.mxu0 %v645_v60  ;;  %v583_v60 = vld [vmem:[#allocation6 + $0x1c0] sm:$0xff] }
  0x96   :  { %736 = vmatpush.msra.mxu2 %v583_v60  ;;  %v533_v60 = vld [vmem:[#allocation6 + $0x30] sm:$0xff] }
  0x97   :  { %698 = vmatpush.msra.mxu0 %v641_v62  ;;  %v585_v62 = vld [vmem:[#allocation6 + $0x1d0] sm:$0xff] }
  0x98   :  { %400 = vmatmul.f32.vlgmr.msrb.gmra.mxu0 %v1632_v12  ;;  %v613_v12 = vld [vmem:[#allocation11 + $0xb0] sm:$0xff] }
  0x99   :  { %699 = vmatpush.msra.mxu0 %v637_v0  ;;  %v579_v0 = vld [vmem:[#allocation6 + $0x1a0] sm:$0xff] }
  0x9a   :  { %737 = vmatpush.msra.mxu2 %v579_v0  ;;  %v528_v0 = vld [vmem:[#allocation6 + $0x8] sm:$0xff] }
  0x9b   :  { %700 = vmatpush.msra.mxu0 %v633_v2  ;;  %v581_v2 = vld [vmem:[#allocation6 + $0x1b0] sm:$0xff] }
  0x9d   :  { %701 = vmatpush.msra.mxu0 %v629_v4  ;;  %v575_v4 = vld [vmem:[#allocation6 + $0x180] sm:$0xff] }
  0x9e   :  { %738 = vmatpush.msra.mxu2 %v575_v4  ;;  %v529_v4 = vld [vmem:[#allocation6 + $0x10] sm:$0xff] }
  0x9f   :  { %702 = vmatpush.msra.mxu0 %v625_v6  ;;  %v577_v6 = vld [vmem:[#allocation6 + $0x190] sm:$0xff] }
  0xa1   :  { %703 = vmatpush.msra.mxu0 %v621_v8  ;;  %v571_v8 = vld [vmem:[#allocation6 + $0x160] sm:$0xff] }
  0xa2   :  { %739 = vmatpush.msra.mxu2 %v571_v8  ;;  %v979_v8 = vld [vmem:[#allocation12 + $0x1e8] sm:$0xff] }
  0xa3   :  { %704 = vmatpush.msra.mxu0 %v617_v10  ;;  %v573_v10 = vld [vmem:[#allocation6 + $0x170] sm:$0xff] }
  0xa5   :  { %705 = vmatpush.msra.mxu0 %v613_v12  ;;  %v567_v12 = vld [vmem:[#allocation6 + $0x140] sm:$0xff] }
  0xa6   :  { %740 = vmatpush.msra.mxu2 %v567_v12 }
  0xa7   :  { %706 = vmatpush.msra.mxu0 %v609_v17  ;;  %v564_v17 = vld [vmem:[#allocation6 + $0x128] sm:$0xff] }
  0xa9   :  { %707 = vmatpush.msra.mxu0 %v605_v42  ;;  %v546_v42 = vld [vmem:[#allocation6 + $0x98] sm:$0xff] }
  0xab   :  { %708 = vmatpush.msra.mxu0 %v601_v46  ;;  %v539_v46 = vld [vmem:[#allocation6 + $0x60] sm:$0xff] }
  0xad   :  { %709 = vmatpush.msra.mxu0 %v597_v50  ;;  %v542_v50 = vld [vmem:[#allocation6 + $0x78] sm:$0xff] }
  0xaf   :  { %710 = vmatpush.msra.mxu0 %v593_v54  ;;  %v537_v54 = vld [vmem:[#allocation6 + $0x50] sm:$0xff] }
  0xb1   :  { %775 = vmatpush.msrb.mxu0 %v589_v58  ;;  %v532_v58 = vld [vmem:[#allocation6 + $0x28] sm:$0xff] }
  0xb3   :  { %776 = vmatpush.msrb.mxu0 %v585_v62 }
  0xb5   :  { %777 = vmatpush.msrb.mxu0 %v581_v2 }
  0xb7   :  { %778 = vmatpush.msrb.mxu0 %v577_v6 }
  0xb9   :  { %779 = vmatpush.msrb.mxu0 %v573_v10  ;;  %v980_v10 = vld [vmem:[#allocation12 + $0x1f0] sm:$0xff] }
  0xc7   :  { %v361_v56 = vpop.f32.mrf.mxu2 }
 0x10d   :  { %v204_v16 = vpop.f32.mrf.mxu0 }
 0x10e   :  { %1251 = vmatmul.msk.f32.vlgmr.msrb.gmra.mxu1 %vm404_vm1, %v204_v16  ;;  %1252 = vmatmul.msk.f32.vlgmr.msrb.gmra.mxu3 %vm404_vm1, %v204_v16 }
 0x10f   :  { %675 = vmatpush.msrb.mxu3 %v652_v14  ;;  %715 = vmatpush.msrb.mxu1 %v654_v15  ;;  %v569_v14 = vld [vmem:[#allocation6 + $0x150] sm:$0xff]  ;;  %v570_v15 = vld [vmem:[#allocation6 + $0x158] sm:$0xff] }
 0x110   :  { %780 = vmatpush.msrb.mxu0 %v569_v14  ;;  %v974_v14 = vld [vmem:[#allocation12 + $0x1c0] sm:$0xff] }
 0x111   :  { %676 = vmatpush.msrb.mxu3 %v648_v18  ;;  %716 = vmatpush.msrb.mxu1 %v650_v19  ;;  %v565_v18 = vld [vmem:[#allocation6 + $0x130] sm:$0xff]  ;;  %v566_v19 = vld [vmem:[#allocation6 + $0x138] sm:$0xff] }
 0x112   :  { %781 = vmatpush.msrb.mxu0 %v565_v18  ;;  %v977_v18 = vld [vmem:[#allocation12 + $0x1d8] sm:$0xff] }
 0x113   :  { %677 = vmatpush.msrb.mxu3 %v644_v20  ;;  %717 = vmatpush.msrb.mxu1 %v646_v21  ;;  %v559_v20 = vld [vmem:[#allocation6 + $0x100] sm:$0xff]  ;;  %v560_v21 = vld [vmem:[#allocation6 + $0x108] sm:$0xff] }
 0x115   :  { %678 = vmatpush.msrb.mxu3 %v640_v22  ;;  %718 = vmatpush.msrb.mxu1 %v642_v23  ;;  %v561_v22 = vld [vmem:[#allocation6 + $0x110] sm:$0xff]  ;;  %v341_v23 = vpop.f32.mrf.mxu1 }
 0x116   :  { %1253 = vmatmul.msk.f32.vlgmr.msra.gmra.mxu3 %vm404_vm1, %v204_v16  ;;  %1254 = vmatmul.msk.f32.vlgmr.msra.gmra.mxu1 %vm404_vm1, %v204_v16  ;;  %v563_v16 = vld [vmem:[#allocation6 + $0x120] sm:$0xff] }
 0x117   :  { %679 = vmatpush.msrb.mxu3 %v636_v24  ;;  %719 = vmatpush.msrb.mxu1 %v638_v25  ;;  %v562_v24 = vld [vmem:[#allocation6 + $0x118] sm:$0xff]  ;;  %v555_v25 = vld [vmem:[#allocation6 + $0xe0] sm:$0xff] }
 0x118   :  { %741 = vmatpush.msra.mxu2 %v563_v16  ;;  %782 = vmatpush.msrb.mxu0 %v561_v22  ;;  %v972_v22 = vld [vmem:[#allocation12 + $0x1b0] sm:$0xff] }
 0x119   :  { %680 = vmatpush.msrb.mxu3 %v632_v26  ;;  %720 = vmatpush.msrb.mxu1 %v634_v27  ;;  %v556_v26 = vld [vmem:[#allocation6 + $0xe8] sm:$0xff]  ;;  %v557_v27 = vld [vmem:[#allocation6 + $0xf0] sm:$0xff] }
 0x11a   :  { %742 = vmatpush.msra.mxu2 %v559_v20  ;;  %783 = vmatpush.msrb.mxu0 %v557_v27  ;;  %v971_v20 = vld [vmem:[#allocation12 + $0x1a8] sm:$0xff] }
 0x11b   :  { %681 = vmatpush.msrb.mxu3 %v628_v28  ;;  %721 = vmatpush.msrb.mxu1 %v630_v29  ;;  %v558_v28 = vld [vmem:[#allocation6 + $0xf8] sm:$0xff]  ;;  %v551_v29 = vld [vmem:[#allocation6 + $0xc0] sm:$0xff]  ;;  %v967_v27 = vld [vmem:[#allocation12 + $0x188] sm:$0xff] }
 0x11c   :  { %743 = vmatpush.msra.mxu2 %v555_v25 }
 0x11d   :  { %682 = vmatpush.msrb.mxu3 %v624_v30  ;;  %722 = vmatpush.msrb.mxu1 %v626_v31  ;;  %v552_v30 = vld [vmem:[#allocation6 + $0xc8] sm:$0xff]  ;;  %v553_v31 = vld [vmem:[#allocation6 + $0xd0] sm:$0xff] }
 0x11e   :  { %744 = vmatpush.msra.mxu2 %v551_v29  ;;  %784 = vmatpush.msrb.mxu0 %v553_v31  ;;  %v968_v29 = vld [vmem:[#allocation12 + $0x190] sm:$0xff]  ;;  %v962_v31 = vld [vmem:[#allocation12 + $0x160] sm:$0xff] }
 0x11f   :  { %683 = vmatpush.msrb.mxu3 %v620_v32  ;;  %723 = vmatpush.msrb.mxu1 %v622_v33  ;;  %v554_v32 = vld [vmem:[#allocation6 + $0xd8] sm:$0xff]  ;;  %v547_v33 = vld [vmem:[#allocation6 + $0xa0] sm:$0xff] }
 0x120   :  { %745 = vmatpush.msra.mxu2 %v547_v33 }
 0x121   :  { %684 = vmatpush.msrb.mxu3 %v616_v34  ;;  %724 = vmatpush.msrb.mxu1 %v618_v35  ;;  %v548_v34 = vld [vmem:[#allocation6 + $0xa8] sm:$0xff]  ;;  %v549_v35 = vld [vmem:[#allocation6 + $0xb0] sm:$0xff] }
 0x122   :  { %785 = vmatpush.msrb.mxu0 %v549_v35  ;;  %v964_v35 = vld [vmem:[#allocation12 + $0x170] sm:$0xff] }
 0x123   :  { %685 = vmatpush.msrb.mxu3 %v612_v36  ;;  %725 = vmatpush.msrb.mxu1 %v614_v37  ;;  %v1642_v36 = vpop.f32.mrf.mxu3  ;;  %v1647_v37 = vld [vmem:[%s1758_s8] sm:$0xf] }
 0x124   :  { %v490_v44 = vperm.slane %v1647_v37, 0 }
 0x125   :  { %686 = vmatpush.msrb.mxu3 %v608_v38  ;;  %726 = vmatpush.msrb.mxu1 %v610_v39  ;;  %v550_v38 = vld [vmem:[#allocation6 + $0xb8] sm:$0xff]  ;;  %v543_v39 = vld [vmem:[#allocation6 + $0x80] sm:$0xff] }
 0x126   :  { %746 = vmatpush.msra.mxu2 %v543_v39  ;;  %v958_v39 = vld [vmem:[#allocation12 + $0x140] sm:$0xff] }
 0x127   :  { %687 = vmatpush.msrb.mxu3 %v604_v41  ;;  %727 = vmatpush.msrb.mxu1 %v606_v43  ;;  %v545_v41 = vld [vmem:[#allocation6 + $0x90] sm:$0xff]  ;;  %v148_v43 = vld [vmem:[%s1761_s11 + $0x8] sm:$0xff] }
 0x128   :  { %786 = vmatpush.msrb.mxu0 %v545_v41  ;;  %671 = vmatmul.f32.vlgmr.msrb.gmra.mxu2 %v148_v43  ;;  %v960_v41 = vld [vmem:[#allocation12 + $0x150] sm:$0xff] }
 0x129   :  { %688 = vmatpush.msrb.mxu3 %v600_v45  ;;  %728 = vmatpush.msrb.mxu1 %v602_v47  ;;  %v540_v47 = vld [vmem:[#allocation6 + $0x68] sm:$0xff] }
 0x12a   :  { %711 = vmatmul.f32.vlgmr.msra.gmra.mxu0 %v148_v43  ;;  %747 = vmatpush.msra.mxu2 %v539_v46  ;;  %v955_v46 = vld [vmem:[#allocation12 + $0x128] sm:$0xff] }
 0x12b   :  { %689 = vmatpush.msrb.mxu3 %v596_v49  ;;  %729 = vmatpush.msrb.mxu1 %v598_v51  ;;  %v541_v49 = vld [vmem:[#allocation6 + $0x70] sm:$0xff]  ;;  %v535_v51 = vld [vmem:[#allocation6 + $0x40] sm:$0xff] }
 0x12c   :  { %787 = vmatpush.msrb.mxu0 %v541_v49  ;;  %748 = vmatpush.msra.mxu2 %v535_v51  ;;  %v951_v51 = vld [vmem:[#allocation12 + $0x108] sm:$0xff] }
 0x12d   :  { %690 = vmatpush.msrb.mxu3 %v592_v53  ;;  %730 = vmatpush.msrb.mxu1 %v594_v55  ;;  %v538_v55 = vld [vmem:[#allocation6 + $0x58] sm:$0xff] }
 0x12e   :  { %691 = vmatmul.f32.vlgmr.msrb.gmra.mxu3 %v148_v43  ;;  %731 = vmatmul.f32.vlgmr.msrb.gmra.mxu1 %v148_v43 }
 0x12f   :  { %755 = vmatpush.msra.mxu3 %v588_v57  ;;  %795 = vmatpush.msra.mxu1 %v590_v59  ;;  %v531_v57 = vld [vmem:[#allocation6 + $0x20] sm:$0xff]  ;;  %v491_v59 = vperm.slane %v1647_v37, 1 }
 0x130   :  { %788 = vmatpush.msrb.mxu0 %v537_v54  ;;  %749 = vmatpush.msra.mxu2 %v531_v57  ;;  %v953_v54 = vld [vmem:[#allocation12 + $0x118] sm:$0xff]  ;;  %v947_v57 = vld [vmem:[#allocation12 + $0xe8] sm:$0xff] }
 0x131   :  { %756 = vmatpush.msra.mxu3 %v584_v61  ;;  %796 = vmatpush.msra.mxu1 %v586_v63  ;;  %v534_v61 = vld [vmem:[#allocation6 + $0x38] sm:$0xff]  ;;  %v527_v63 = vld [vmem:[#allocation6] sm:$0xff] }
 0x132   :  { %789 = vmatpush.msrb.mxu0 %v533_v60  ;;  %750 = vmatpush.msra.mxu2 %v527_v63  ;;  %v949_v60 = vld [vmem:[#allocation12 + $0xf8] sm:$0xff] }
 0x133   :  { %757 = vmatpush.msra.mxu3 %v580_v1  ;;  %797 = vmatpush.msra.mxu1 %v582_v3  ;;  %v401_v3 = vpop.f32.mrf.mxu0 }
 0x134   :  { %790 = vmatpush.msrb.mxu0 %v529_v4 }
 0x135   :  { %758 = vmatpush.msra.mxu3 %v576_v5  ;;  %798 = vmatpush.msra.mxu1 %v578_v7  ;;  %v530_v5 = vld [vmem:[#allocation6 + $0x18] sm:$0xff]  ;;  %v978_v7 = vld [vmem:[#allocation12 + $0x1e0] sm:$0xff] }
 0x136   :  { %982 = vmatpush.msrb.mxu2 %v978_v7  ;;  %1022 = vmatpush.msra.mxu0 %v980_v10  ;;  %v944_v7 = vld [vmem:[#allocation12 + $0xd0] sm:$0xff]  ;;  %v939_v10 = vld [vmem:[#allocation12 + $0xa8] sm:$0xff] }
 0x137   :  { %759 = vmatpush.msra.mxu3 %v572_v9  ;;  %799 = vmatpush.msra.mxu1 %v574_v11  ;;  %v981_v11 = vld [vmem:[#allocation12 + $0x1f8] sm:$0xff] }
 0x138   :  { %983 = vmatpush.msrb.mxu2 %v974_v14  ;;  %v935_v14 = vld [vmem:[#allocation12 + $0x88] sm:$0xff] }
 0x139   :  { %760 = vmatpush.msra.mxu3 %v568_v13  ;;  %800 = vmatpush.msra.mxu1 %v570_v15  ;;  %v493_v13 = vperm.slane %v1647_v37, 3  ;;  %v975_v15 = vld [vmem:[#allocation12 + $0x1c8] sm:$0xff] }
 0x13b   :  { %761 = vmatpush.msra.mxu3 %v564_v17  ;;  %801 = vmatpush.msra.mxu1 %v566_v19  ;;  %v976_v17 = vld [vmem:[#allocation12 + $0x1d0] sm:$0xff]  ;;  %v970_v19 = vld [vmem:[#allocation12 + $0x1a0] sm:$0xff] }
 0x13c   :  { %1023 = vmatpush.msra.mxu0 %v976_v17  ;;  %984 = vmatpush.msrb.mxu2 %v970_v19  ;;  %v930_v17 = vld [vmem:[#allocation12 + $0x60] sm:$0xff]  ;;  %v932_v19 = vld [vmem:[#allocation12 + $0x70] sm:$0xff] }
 0x13d   :  { %762 = vmatpush.msra.mxu3 %v560_v21  ;;  %802 = vmatpush.msra.mxu1 %v562_v24  ;;  %v492_v21 = vperm.slane %v1647_v37, 2  ;;  %v965_v37 = vld [vmem:[#allocation12 + $0x178] sm:$0xff] }
 0x13e   :  { %1024 = vmatpush.msra.mxu0 %v972_v22  ;;  %v927_v22 = vld [vmem:[#allocation12 + $0x48] sm:$0xff] }
 0x13f   :  { %763 = vmatpush.msra.mxu3 %v556_v26  ;;  %803 = vmatpush.msra.mxu1 %v558_v28  ;;  %v966_v26 = vld [vmem:[#allocation12 + $0x180] sm:$0xff] }
 0x140   :  { %985 = vmatpush.msrb.mxu2 %v966_v26  ;;  %1025 = vmatpush.msra.mxu0 %v968_v29  ;;  %v923_v26 = vld [vmem:[#allocation12 + $0x28] sm:$0xff]  ;;  %v918_v29 = vld [vmem:[#allocation12] sm:$0xff] }
 0x141   :  { %764 = vmatpush.msra.mxu3 %v552_v30  ;;  %804 = vmatpush.msra.mxu1 %v554_v32  ;;  %v969_v30 = vld [vmem:[#allocation12 + $0x198] sm:$0xff]  ;;  %v963_v32 = vld [vmem:[#allocation12 + $0x168] sm:$0xff] }
 0x142   :  { %986 = vmatpush.msrb.mxu2 %v962_v31  ;;  %1026 = vmatpush.msra.mxu0 %v964_v35  ;;  %v920_v31 = vld [vmem:[#allocation12 + $0x10] sm:$0xff] }
 0x143   :  { %765 = vmatpush.msra.mxu3 %v548_v34  ;;  %805 = vmatpush.msra.mxu1 %v550_v38  ;;  %v916_v35 = vld [vmem:[#allocation8 + $0x1f0] sm:$0xff] }
 0x144   :  { %987 = vmatpush.msrb.mxu2 %v958_v39  ;;  %1027 = vmatpush.msra.mxu0 %v960_v41  ;;  %v911_v39 = vld [vmem:[#allocation8 + $0x1c8] sm:$0xff]  ;;  %v906_v41 = vld [vmem:[#allocation8 + $0x1a0] sm:$0xff] }
 0x145   :  { %766 = vmatpush.msra.mxu3 %v544_v40  ;;  %806 = vmatpush.msra.mxu1 %v546_v42  ;;  %v959_v40 = vld [vmem:[#allocation12 + $0x148] sm:$0xff]  ;;  %v961_v42 = vld [vmem:[#allocation12 + $0x158] sm:$0xff] }
 0x147   :  { %767 = vmatpush.msra.mxu3 %v540_v47  ;;  %807 = vmatpush.msra.mxu1 %v542_v50  ;;  %v956_v47 = vld [vmem:[#allocation12 + $0x130] sm:$0xff]  ;;  %v950_v50 = vld [vmem:[#allocation12 + $0x100] sm:$0xff] }
 0x148   :  { %1028 = vmatpush.msra.mxu0 %v956_v47  ;;  %v904_v47 = vld [vmem:[#allocation8 + $0x190] sm:$0xff] }
 0x149   :  { %768 = vmatpush.msra.mxu3 %v536_v52  ;;  %808 = vmatpush.msra.mxu1 %v538_v55  ;;  %v1246_v52 = vld [vmem:[%s1761_s11 + $0x18] sm:$0xff] }
 0x14b   :  { %769 = vmatpush.msra.mxu3 %v532_v58  ;;  %809 = vmatpush.msra.mxu1 %v534_v61 }
 0x14d   :  { %770 = vmatpush.msra.mxu3 %v528_v0  ;;  %810 = vmatpush.msra.mxu1 %v530_v5  ;;  %v942_v5 = vld [vmem:[#allocation12 + $0xc0] sm:$0xff] }
 0x14f   :  { %1002 = vmatpush.msrb.mxu3 %v979_v8  ;;  %1042 = vmatpush.msrb.mxu1 %v981_v11  ;;  %v945_v8 = vld [vmem:[#allocation12 + $0xd8] sm:$0xff]  ;;  %v940_v11 = vld [vmem:[#allocation12 + $0xb0] sm:$0xff] }
 0x151   :  { %1003 = vmatpush.msrb.mxu3 %v975_v15  ;;  %1043 = vmatpush.msrb.mxu1 %v977_v18  ;;  %v936_v15 = vld [vmem:[#allocation12 + $0x90] sm:$0xff]  ;;  %v931_v18 = vld [vmem:[#allocation12 + $0x68] sm:$0xff] }
 0x153   :  { %1004 = vmatpush.msrb.mxu3 %v971_v20  ;;  %v933_v20 = vld [vmem:[#allocation12 + $0x78] sm:$0xff] }
 0x155   :  { %1005 = vmatpush.msrb.mxu3 %v967_v27  ;;  %v924_v27 = vld [vmem:[#allocation12 + $0x30] sm:$0xff] }
 0x157   :  { %1006 = vmatpush.msrb.mxu3 %v963_v32  ;;  %v921_v32 = vld [vmem:[#allocation12 + $0x18] sm:$0xff] }
 0x159   :  { %1007 = vmatpush.msrb.mxu3 %v959_v40  ;;  %v912_v40 = vld [vmem:[#allocation8 + $0x1d0] sm:$0xff] }
 0x15b   :  { %1008 = vmatpush.msrb.mxu3 %v955_v46  ;;  %v903_v46 = vld [vmem:[#allocation8 + $0x188] sm:$0xff] }
 0x15d   :  { %1009 = vmatpush.msrb.mxu3 %v951_v51  ;;  %v900_v51 = vld [vmem:[#allocation8 + $0x170] sm:$0xff] }
 0x15f   :  { %1010 = vmatpush.msrb.mxu3 %v947_v57  ;;  %v890_v57 = vld [vmem:[#allocation8 + $0x120] sm:$0xff] }
 0x18b   :  { %v425_v45 = vpop.f32.mrf.mxu1 }
 0x18c   :  { %v426_v48 = vadd.f32 %v425_v45, %v341_v23  ;;  %v973_v23 = vld [vmem:[#allocation12 + $0x1b8] sm:$0xff]  ;;  %v954_v45 = vld [vmem:[#allocation12 + $0x120] sm:$0xff] }
 0x18d   :  { %1044 = vmatpush.msrb.mxu1 %v973_v23  ;;  %988 = vmatpush.msrb.mxu2 %v954_v45  ;;  %v928_v23 = vld [vmem:[#allocation12 + $0x50] sm:$0xff]  ;;  %v902_v45 = vld [vmem:[#allocation8 + $0x180] sm:$0xff] }
 0x18e   :  { %v498_v53 = vadd.f32 %v490_v44, %v426_v48  ;;  %v957_v48 = vld [vmem:[#allocation12 + $0x138] sm:$0xff] }
 0x18f   :  { %1045 = vmatpush.msrb.mxu1 %v969_v30  ;;  %989 = vmatpush.msrb.mxu2 %v950_v50  ;;  %v919_v30 = vld [vmem:[#allocation12 + $0x8] sm:$0xff] }
 0x190   :  { %v502_v1 = vmul.f32 0.5, %v498_v53  ;;  %v952_v53 = vld [vmem:[#allocation12 + $0x110] sm:$0xff]  ;;  %v899_v50 = vld [vmem:[#allocation8 + $0x168] sm:$0xff] }
 0x191   :  { %v445_v62 = vpop.f32.mrf.mxu3  ;;  %1046 = vmatpush.msrb.mxu1 %v965_v37  ;;  %1029 = vmatpush.msra.mxu0 %v952_v53  ;;  %v917_v37 = vld [vmem:[#allocation8 + $0x1f8] sm:$0xff]  ;;  %v894_v53 = vld [vmem:[#allocation8 + $0x140] sm:$0xff] }
 0x192   :  { %v446_v2 = vadd.f32 %v445_v62, %v361_v56  ;;  %1270 = vtanh.f32 %v502_v1  ;;  %v946_v56 = vld [vmem:[#allocation12 + $0xe0] sm:$0xff] }
 0x193   :  { %v485_v6 = vpop.f32.mrf.mxu1  ;;  %1047 = vmatpush.msrb.mxu1 %v961_v42  ;;  %990 = vmatpush.msrb.mxu2 %v946_v56  ;;  %v907_v42 = vld [vmem:[#allocation8 + $0x1a8] sm:$0xff]  ;;  %v897_v56 = vld [vmem:[#allocation8 + $0x158] sm:$0xff] }
 0x194   :  { %v499_v9 = vadd.f32 %v491_v59, %v446_v2  ;;  %v486_v12 = vadd.f32 %v485_v6, %v401_v3  ;;  %v948_v59 = vld [vmem:[#allocation12 + $0xf0] sm:$0xff]  ;;  %v943_v6 = vld [vmem:[#allocation12 + $0xc8] sm:$0xff] }
 0x195   :  { %1048 = vmatpush.msrb.mxu1 %v957_v48  ;;  %1030 = vmatpush.msra.mxu0 %v948_v59  ;;  %v905_v48 = vld [vmem:[#allocation8 + $0x198] sm:$0xff]  ;;  %v892_v59 = vld [vmem:[#allocation8 + $0x130] sm:$0xff] }
 0x196   :  { %v503_v16 = vmul.f32 0.5, %v499_v9  ;;  %v501_v24 = vadd.f32 %v493_v13, %v486_v12  ;;  %991 = vmatpush.msrb.mxu2 %v942_v5  ;;  %1011 = vmatpush.msrb.mxu3 %v943_v6  ;;  %v938_v9 = vld [vmem:[#allocation12 + $0xa0] sm:$0xff]  ;;  %v941_v12 = vld [vmem:[#allocation12 + $0xb8] sm:$0xff]  ;;  %v879_v6 = vld [vmem:[#allocation8 + $0xc8] sm:$0xff] }
 0x197   :  { %1049 = vmatpush.msrb.mxu1 %v953_v54  ;;  %1031 = vmatpush.msra.mxu0 %v944_v7  ;;  %v934_v13 = vld [vmem:[#allocation12 + $0x80] sm:$0xff]  ;;  %v895_v54 = vld [vmem:[#allocation8 + $0x148] sm:$0xff]  ;;  %v880_v7 = vld [vmem:[#allocation8 + $0xd0] sm:$0xff] }
 0x198   :  { %1272 = vtanh.f32 %v503_v16  ;;  %v1271_v33 = vpop.eup %1270  ;;  %v505_v38 = vmul.f32 0.5, %v501_v24  ;;  %992 = vmatpush.msrb.mxu2 %v938_v9  ;;  %1012 = vmatpush.msrb.mxu3 %v939_v10  ;;  %v937_v16 = vld [vmem:[#allocation12 + $0x98] sm:$0xff]  ;;  %v878_v5 = vld [vmem:[#allocation8 + $0xc0] sm:$0xff]  ;;  %v875_v10 = vld [vmem:[#allocation8 + $0xa8] sm:$0xff] }
 0x199   :  { %v465_v25 = vpop.f32.mrf.mxu3  ;;  %v510_v43 = vadd.f32 1.0, %v1271_v33  ;;  %1050 = vmatpush.msrb.mxu1 %v949_v60  ;;  %1032 = vmatpush.msra.mxu0 %v940_v11  ;;  %v929_v24 = vld [vmem:[#allocation12 + $0x58] sm:$0xff]  ;;  %v914_v33 = vld [vmem:[#allocation8 + $0x1e0] sm:$0xff]  ;;  %v876_v11 = vld [vmem:[#allocation8 + $0xb0] sm:$0xff] }
 0x19a   :  { %v466_v28 = vadd.f32 %v465_v25, %v1642_v36  ;;  %993 = vmatpush.msrb.mxu2 %v934_v13  ;;  %1013 = vmatpush.msrb.mxu3 %v935_v14  ;;  %v922_v25 = vld [vmem:[#allocation12 + $0x20] sm:$0xff]  ;;  %v893_v60 = vld [vmem:[#allocation8 + $0x138] sm:$0xff] }
 0x19b   :  { %v513_v55 = vmul.f32 0.5, %v510_v43  ;;  %1051 = vmatpush.msrb.mxu1 %v945_v8  ;;  %1033 = vmatpush.msra.mxu0 %v936_v15  ;;  %v908_v43 = vld [vmem:[#allocation8 + $0x1b0] sm:$0xff]  ;;  %v881_v8 = vld [vmem:[#allocation8 + $0xd8] sm:$0xff]  ;;  %v874_v9 = vld [vmem:[#allocation8 + $0xa0] sm:$0xff] }
 0x19c   :  { %v500_v34 = vadd.f32 %v492_v21, %v466_v28  ;;  %994 = vmatpush.msrb.mxu2 %v930_v17  ;;  %1014 = vmatpush.msrb.mxu3 %v931_v18  ;;  %v926_v21 = vld [vmem:[#allocation12 + $0x40] sm:$0xff]  ;;  %v925_v28 = vld [vmem:[#allocation12 + $0x38] sm:$0xff]  ;;  %v871_v18 = vld [vmem:[#allocation8 + $0x88] sm:$0xff] }
 0x19d   :  { %1052 = vmatpush.msrb.mxu1 %v941_v12  ;;  %1034 = vmatpush.msra.mxu0 %v932_v19  ;;  %v877_v14 = vld [vmem:[#allocation8 + $0xb8] sm:$0xff]  ;;  %v870_v17 = vld [vmem:[#allocation8 + $0x80] sm:$0xff]  ;;  %v872_v19 = vld [vmem:[#allocation8 + $0x90] sm:$0xff] }
 0x19e   :  { %v1273_v36 = vpop.eup %1272  ;;  %1274 = vtanh.f32 %v500_v34  ;;  %995 = vmatpush.msrb.mxu2 %v926_v21  ;;  %1015 = vmatpush.msrb.mxu3 %v927_v22  ;;  %v915_v34 = vld [vmem:[#allocation8 + $0x1e8] sm:$0xff]  ;;  %v149_v21 = vld [vmem:[%s1761_s11 + $0x10] sm:$0xff]  ;;  %v866_v22 = vld [vmem:[#allocation8 + $0x60] sm:$0xff] }
 0x19f   :  { %v511_v44 = vadd.f32 1.0, %v1273_v36  ;;  %1276 = vtanh.f32 %v505_v38  ;;  %1053 = vmatpush.msrb.mxu1 %v937_v16  ;;  %1035 = vmatpush.msra.mxu0 %v928_v23  ;;  %v910_v38 = vld [vmem:[#allocation8 + $0x1c0] sm:$0xff]  ;;  %v913_v36 = vld [vmem:[#allocation8 + $0x1d8] sm:$0xff]  ;;  %v867_v23 = vld [vmem:[#allocation8 + $0x68] sm:$0xff] }
 0x1a0   :  { %996 = vmatpush.msrb.mxu2 %v922_v25  ;;  %1016 = vmatpush.msrb.mxu3 %v923_v26  ;;  %v869_v25 = vld [vmem:[#allocation8 + $0x78] sm:$0xff]  ;;  %v862_v26 = vld [vmem:[#allocation8 + $0x40] sm:$0xff] }
 0x1a1   :  { %v514_v49 = vmul.f32 0.5, %v511_v44  ;;  %1054 = vmatpush.msrb.mxu1 %v933_v20  ;;  %1036 = vmatpush.msra.mxu0 %v924_v27  ;;  %v909_v44 = vld [vmem:[#allocation8 + $0x1b8] sm:$0xff]  ;;  %v863_v27 = vld [vmem:[#allocation8 + $0x48] sm:$0xff] }
 0x1a2   :  { %997 = vmatpush.msrb.mxu2 %v918_v29  ;;  %1017 = vmatpush.msrb.mxu3 %v919_v30  ;;  %v873_v20 = vld [vmem:[#allocation8 + $0x98] sm:$0xff]  ;;  %v858_v30 = vld [vmem:[#allocation8 + $0x20] sm:$0xff] }
 0x1a3   :  { %v516_v61 = vmul.f32 %v1246_v52, %v514_v49  ;;  %1055 = vmatpush.msrb.mxu1 %v929_v24  ;;  %1037 = vmatpush.msra.mxu0 %v920_v31  ;;  %v898_v49 = vld [vmem:[#allocation8 + $0x160] sm:$0xff]  ;;  %v901_v52 = vld [vmem:[#allocation8 + $0x178] sm:$0xff]  ;;  %v868_v24 = vld [vmem:[#allocation8 + $0x70] sm:$0xff] }
 0x1a4   :  { %v1275_v58 = vpop.eup %1274  ;;  %v865_v29 = vld [vmem:[#allocation8 + $0x58] sm:$0xff]  ;;  %v859_v31 = vld [vmem:[#allocation8 + $0x28] sm:$0xff] }
 0x1a5   :  { %v517_v62 = vmul.f32 %v1275_v58, %v513_v55  ;;  %v1277_v63 = vpop.eup %1276  ;;  %1056 = vmatpush.msrb.mxu1 %v925_v28  ;;  %v896_v55 = vld [vmem:[#allocation8 + $0x150] sm:$0xff]  ;;  %v891_v58 = vld [vmem:[#allocation8 + $0x128] sm:$0xff] }
 0x1a6   :  { %v512_v1 = vadd.f32 1.0, %v1277_v63  ;;  %v888_v63 = vld [vmem:[#allocation8 + $0x110] sm:$0xff] }
 0x1a7   :  { %v518_v0 = vadd.f32 %v517_v62, %v516_v61  ;;  %1057 = vmatpush.msrb.mxu1 %v921_v32  ;;  %v886_v61 = vld [vmem:[#allocation8 + $0x100] sm:$0xff]  ;;  %v887_v62 = vld [vmem:[#allocation8 + $0x108] sm:$0xff]  ;;  %v712_v12 = vpop.f32.mrf.mxu0  ;;  %v864_v28 = vld [vmem:[#allocation8 + $0x50] sm:$0xff] }
 0x1a8   :  { %v515_v2 = vmul.f32 0.5, %v512_v1  ;;  %v882_v1 = vld [vmem:[#allocation8 + $0xe0] sm:$0xff] }
 0x1a9   :  { %1278 = vtanh.f32 %v518_v0  ;;  %1255 = vst [vmem:[%s1765_s15 + $0x18] sm:$0xff] %v518_v0  ;;  %v889_v0 = vld [vmem:[#allocation8 + $0x118] sm:$0xff]  ;;  %v815_v32 = vld [vmem:[%s1759_s9] sm:$0xf] }
 0x1ab   :  { %v1666_v13 = vpop.f32.mrf.mxu1  ;;  %v672_v15 = vpop.f32.mrf.mxu2 }
 0x1af   :  { %v1279_v3 = vpop.eup %1278 }
 0x1b0   :  { %v520_v4 = vmul.f32 %v1279_v3, %v515_v2  ;;  %v883_v2 = vld [vmem:[#allocation8 + $0xe8] sm:$0xff]  ;;  %v884_v3 = vld [vmem:[#allocation8 + $0xf0] sm:$0xff] }
 0x1b1   :  { %v692_v16 = vpop.f32.mrf.mxu3 }
 0x1b2   :  { %751 = vmatmul.f32.vlgmr.msra.gmra.mxu2 %v520_v4  ;;  %1224 = vst [vmem:[%s1765_s15] sm:$0xff] %v520_v4  ;;  %771 = vmatmul.f32.vlgmr.msra.gmra.mxu3 %v520_v4 }
 0x1b3   :  { %791 = vmatmul.f32.vlgmr.msrb.gmra.mxu0 %v520_v4  ;;  %811 = vmatmul.f32.vlgmr.msra.gmra.mxu1 %v520_v4  ;;  %v885_v4 = vld [vmem:[#allocation8 + $0xf8] sm:$0xff] }
 0x1b4   :  { %1062 = vmatpush.msra.mxu2 %v914_v33  ;;  %1082 = vmatpush.msra.mxu3 %v915_v34  ;;  %v860_v33 = vld [vmem:[#allocation8 + $0x30] sm:$0xff]  ;;  %v861_v34 = vld [vmem:[#allocation8 + $0x38] sm:$0xff] }
 0x1b5   :  { %1102 = vmatpush.msrb.mxu0 %v916_v35  ;;  %1122 = vmatpush.msra.mxu1 %v917_v37 }
 0x1b6   :  { %1063 = vmatpush.msra.mxu2 %v910_v38  ;;  %1083 = vmatpush.msra.mxu3 %v911_v39  ;;  %v817_v38 = vperm.slane %v815_v32, 0  ;;  %v818_v39 = vperm.slane %v815_v32, 1 }
 0x1b7   :  { %1103 = vmatpush.msrb.mxu0 %v912_v40  ;;  %1123 = vmatpush.msra.mxu1 %v913_v36  ;;  %v854_v40 = vld [vmem:[#allocation8] sm:$0xff]  ;;  %v855_v36 = vld [vmem:[#allocation8 + $0x8] sm:$0xff] }
 0x1b8   :  { %1064 = vmatpush.msra.mxu2 %v906_v41  ;;  %1084 = vmatpush.msra.mxu3 %v907_v42 }
 0x1b9   :  { %1104 = vmatpush.msrb.mxu0 %v908_v43  ;;  %1124 = vmatpush.msra.mxu1 %v909_v44  ;;  %v856_v43 = vld [vmem:[#allocation8 + $0x10] sm:$0xff]  ;;  %v857_v44 = vld [vmem:[#allocation8 + $0x18] sm:$0xff] }
 0x1ba   :  { %1065 = vmatpush.msra.mxu2 %v902_v45  ;;  %1085 = vmatpush.msra.mxu3 %v903_v46 }
 0x1bb   :  { %1105 = vmatpush.msrb.mxu0 %v904_v47  ;;  %1125 = vmatpush.msra.mxu1 %v905_v48  ;;  %v819_v48 = vperm.slane %v815_v32, 2 }
 0x1bc   :  { %1066 = vmatpush.msra.mxu2 %v898_v49  ;;  %1086 = vmatpush.msra.mxu3 %v899_v50  ;;  %v820_v50 = vperm.slane %v815_v32, 3 }
 0x1bd   :  { %1106 = vmatpush.msrb.mxu0 %v900_v51  ;;  %1126 = vmatpush.msra.mxu1 %v901_v52 }
 0x1be   :  { %1067 = vmatpush.msra.mxu2 %v894_v53  ;;  %1087 = vmatpush.msra.mxu3 %v895_v54 }
 0x1bf   :  { %1107 = vmatpush.msrb.mxu0 %v896_v55  ;;  %1127 = vmatpush.msra.mxu1 %v897_v56 }
 0x1c0   :  { %1068 = vmatpush.msra.mxu2 %v890_v57  ;;  %1088 = vmatpush.msra.mxu3 %v891_v58 }
 0x1c1   :  { %1108 = vmatpush.msrb.mxu0 %v892_v59  ;;  %1128 = vmatpush.msra.mxu1 %v893_v60 }
 0x1c2   :  { %1069 = vmatpush.msra.mxu2 %v886_v61  ;;  %1089 = vmatpush.msra.mxu3 %v887_v62 }
 0x1c3   :  { %1109 = vmatpush.msrb.mxu0 %v888_v63  ;;  %1129 = vmatpush.msra.mxu1 %v889_v0  ;;  %v1247_v63 = vld [vmem:[%s1761_s11 + $0x20] sm:$0xff] }
 0x1c4   :  { %1070 = vmatpush.msra.mxu2 %v882_v1  ;;  %1090 = vmatpush.msra.mxu3 %v883_v2 }
 0x1c5   :  { %1110 = vmatpush.msrb.mxu0 %v884_v3  ;;  %1130 = vmatpush.msra.mxu1 %v885_v4 }
 0x1c6   :  { %1071 = vmatpush.msra.mxu2 %v878_v5  ;;  %1091 = vmatpush.msra.mxu3 %v879_v6 }
 0x1c7   :  { %1111 = vmatpush.msrb.mxu0 %v880_v7  ;;  %1131 = vmatpush.msra.mxu1 %v881_v8 }
 0x1c8   :  { %1072 = vmatpush.msra.mxu2 %v874_v9  ;;  %1092 = vmatpush.msra.mxu3 %v875_v10  ;;  %v1192_v10 = vld [vmem:[%s1762_s12 + $0x78] sm:$0xff] }
 0x1c9   :  { %1112 = vmatpush.msrb.mxu0 %v876_v11  ;;  %1132 = vmatpush.msra.mxu1 %v877_v14  ;;  %v1191_v11 = vld [vmem:[%s1762_s12 + $0x70] sm:$0xff]  ;;  %v1188_v14 = vld [vmem:[%s1762_s12 + $0x58] sm:$0xff] }
 0x1ca   :  { %1073 = vmatpush.msra.mxu2 %v870_v17  ;;  %1093 = vmatpush.msra.mxu3 %v871_v18  ;;  %v1185_v17 = vld [vmem:[%s1762_s12 + $0x40] sm:$0xff]  ;;  %v1184_v18 = vld [vmem:[%s1762_s12 + $0x38] sm:$0xff] }
 0x1cb   :  { %1113 = vmatpush.msrb.mxu0 %v872_v19  ;;  %1133 = vmatpush.msra.mxu1 %v873_v20  ;;  %v1183_v19 = vld [vmem:[%s1762_s12 + $0x30] sm:$0xff]  ;;  %v1182_v20 = vld [vmem:[%s1762_s12 + $0x28] sm:$0xff] }
 0x1cc   :  { %998 = vmatmul.f32.vlgmr.msrb.gmra.mxu2 %v149_v21  ;;  %1018 = vmatmul.f32.vlgmr.msrb.gmra.mxu3 %v149_v21 }
 0x1cd   :  { %1038 = vmatmul.f32.vlgmr.msra.gmra.mxu0 %v149_v21  ;;  %1058 = vmatmul.f32.vlgmr.msrb.gmra.mxu1 %v149_v21 }
 0x1ce   :  { %1074 = vmatpush.msra.mxu2 %v866_v22  ;;  %1094 = vmatpush.msra.mxu3 %v867_v23 }
 0x1cf   :  { %1114 = vmatpush.msrb.mxu0 %v868_v24  ;;  %1134 = vmatpush.msra.mxu1 %v869_v25  ;;  %v1181_v25 = vld [vmem:[%s1762_s12 + $0x20] sm:$0xff] }
 0x1d0   :  { %1075 = vmatpush.msra.mxu2 %v862_v26  ;;  %1095 = vmatpush.msra.mxu3 %v863_v27  ;;  %v1180_v26 = vld [vmem:[%s1762_s12 + $0x18] sm:$0xff]  ;;  %v1179_v27 = vld [vmem:[%s1762_s12 + $0x10] sm:$0xff] }
 0x1d1   :  { %1115 = vmatpush.msrb.mxu0 %v864_v28  ;;  %1135 = vmatpush.msra.mxu1 %v865_v29  ;;  %v1178_v28 = vld [vmem:[%s1762_s12 + $0x8] sm:$0xff]  ;;  %v1177_v29 = vld [vmem:[%s1762_s12] sm:$0xff] }
 0x1d2   :  { %1076 = vmatpush.msra.mxu2 %v858_v30  ;;  %1096 = vmatpush.msra.mxu3 %v859_v31  ;;  %v1142_v30 = vld [vmem:[%s1760_s10] sm:$0xf] }
 0x1d3   :  { %1116 = vmatpush.msrb.mxu0 %v860_v33  ;;  %1136 = vmatpush.msra.mxu1 %v861_v34  ;;  %v1144_v33 = vperm.slane %v1142_v30, 0  ;;  %v1145_v34 = vperm.slane %v1142_v30, 1 }
 0x1d4   :  { %1077 = vmatpush.msra.mxu2 %v854_v40  ;;  %1097 = vmatpush.msra.mxu3 %v855_v36  ;;  %v1146_v40 = vperm.slane %v1142_v30, 2  ;;  %v1147_v36 = vperm.slane %v1142_v30, 3 }
 0x1d5   :  { %1117 = vmatpush.msrb.mxu0 %v856_v43  ;;  %1137 = vmatpush.msra.mxu1 %v857_v44 }
 0x1d6   :  { %1197 = vmatpush.msrb.mxu2 %v1192_v10 }
 0x1d8   :  { %1198 = vmatpush.msrb.mxu2 %v1191_v11 }
 0x230   :  { %v792_v35 = vpop.f32.mrf.mxu0  ;;  %v812_v37 = vpop.f32.mrf.mxu1 }
 0x231   :  { %v793_v47 = vadd.f32 %v792_v35, %v712_v12  ;;  %v813_v49 = vadd.f32 %v812_v37, %v1666_v13  ;;  %v1190_v12 = vld [vmem:[%s1762_s12 + $0x68] sm:$0xff]  ;;  %v1189_v13 = vld [vmem:[%s1762_s12 + $0x60] sm:$0xff] }
 0x232   :  { %1199 = vmatpush.msrb.mxu2 %v1190_v12 }
 0x233   :  { %v827_v55 = vadd.f32 %v819_v48, %v793_v47  ;;  %v828_v56 = vadd.f32 %v820_v50, %v813_v49 }
 0x234   :  { %1200 = vmatpush.msrb.mxu2 %v1189_v13 }
 0x235   :  { %v752_v41 = vpop.f32.mrf.mxu2  ;;  %v772_v42 = vpop.f32.mrf.mxu3  ;;  %v832_v57 = vmul.f32 0.5, %v828_v56 }
 0x236   :  { %v753_v45 = vadd.f32 %v752_v41, %v672_v15  ;;  %v773_v46 = vadd.f32 %v772_v42, %v692_v16  ;;  %1201 = vmatpush.msrb.mxu2 %v1188_v14  ;;  %v1187_v15 = vld [vmem:[%s1762_s12 + $0x50] sm:$0xff]  ;;  %v1186_v16 = vld [vmem:[%s1762_s12 + $0x48] sm:$0xff] }
 0x238   :  { %v825_v51 = vadd.f32 %v817_v38, %v753_v45  ;;  %v826_v52 = vadd.f32 %v818_v39, %v773_v46  ;;  %1202 = vmatpush.msrb.mxu2 %v1187_v15 }
 0x23a   :  { %v829_v53 = vmul.f32 0.5, %v825_v51  ;;  %v830_v54 = vmul.f32 0.5, %v826_v52  ;;  %1203 = vmatpush.msrb.mxu2 %v1186_v16 }
 0x23c   :  { %1280 = vtanh.f32 %v829_v53  ;;  %1204 = vmatpush.msrb.mxu2 %v1185_v17 }
 0x23d   :  { %1282 = vtanh.f32 %v830_v54 }
 0x23e   :  { %1284 = vtanh.f32 %v827_v55  ;;  %1205 = vmatpush.msrb.mxu2 %v1184_v18  ;;  %v1248_v55 = vld [vmem:[%s1761_s11 + $0x28] sm:$0xff] }
 0x23f   :  { %1286 = vtanh.f32 %v832_v57 }
 0x240   :  { %1206 = vmatpush.msrb.mxu2 %v1183_v19 }
 0x242   :  { %v1281_v58 = vpop.eup %1280  ;;  %1207 = vmatpush.msrb.mxu2 %v1182_v20 }
 0x243   :  { %v1283_v59 = vpop.eup %1282  ;;  %v837_v60 = vadd.f32 1.0, %v1281_v58 }
 0x244   :  { %v838_v61 = vadd.f32 1.0, %v1283_v59  ;;  %v1285_v0 = vpop.eup %1284  ;;  %1208 = vmatpush.msrb.mxu2 %v1181_v25 }
 0x245   :  { %v840_v62 = vmul.f32 0.5, %v837_v60  ;;  %v1287_v4 = vpop.eup %1286 }
 0x246   :  { %v841_v1 = vmul.f32 0.5, %v838_v61  ;;  %v839_v6 = vadd.f32 1.0, %v1287_v4  ;;  %1209 = vmatpush.msrb.mxu2 %v1180_v26 }
 0x247   :  { %v844_v2 = vmul.f32 %v1285_v0, %v840_v62 }
 0x248   :  { %v843_v3 = vmul.f32 %v1247_v63, %v841_v1  ;;  %v842_v7 = vmul.f32 0.5, %v839_v6  ;;  %1210 = vmatpush.msrb.mxu2 %v1179_v27 }
 0x24a   :  { %v845_v5 = vadd.f32 %v844_v2, %v843_v3  ;;  %v1039_v21 = vpop.f32.mrf.mxu0  ;;  %v1059_v22 = vpop.f32.mrf.mxu1  ;;  %1211 = vmatpush.msrb.mxu2 %v1178_v28  ;;  %v1269_v2 = vld [vmem:[%s1763_s13] ss:$0 sm:$0xff] }
 0x24c   :  { %1288 = vtanh.f32 %v845_v5  ;;  %1256 = vst [vmem:[%s1765_s15 + $0x20] sm:$0xff] %v845_v5  ;;  %1212 = vmatpush.msrb.mxu2 %v1177_v29 }
 0x24f   :  { %v999_v23 = vpop.f32.mrf.mxu2  ;;  %v1019_v24 = vpop.f32.mrf.mxu3 }
 0x252   :  { %v1289_v8 = vpop.eup %1288 }
 0x253   :  { %v847_v9 = vmul.f32 %v1289_v8, %v842_v7 }
 0x255   :  { %1078 = vmatmul.f32.vlgmr.msra.gmra.mxu2 %v847_v9  ;;  %1225 = vst [vmem:[%s1765_s15 + $0x8] sm:$0xff] %v847_v9  ;;  %1098 = vmatmul.f32.vlgmr.msra.gmra.mxu3 %v847_v9 }
 0x256   :  { %1118 = vmatmul.f32.vlgmr.msrb.gmra.mxu0 %v847_v9  ;;  %1138 = vmatmul.f32.vlgmr.msra.gmra.mxu1 %v847_v9 }
 0x2d3   :  { %v1119_v31 = vpop.f32.mrf.mxu0  ;;  %v1139_v32 = vpop.f32.mrf.mxu1 }
 0x2d4   :  { %v1120_v41 = vadd.f32 %v1119_v31, %v1039_v21  ;;  %v1140_v42 = vadd.f32 %v1139_v32, %v1059_v22 }
 0x2d6   :  { %v1154_v47 = vadd.f32 %v1146_v40, %v1120_v41  ;;  %v1155_v48 = vadd.f32 %v1147_v36, %v1140_v42 }
 0x2d8   :  { %v1079_v35 = vpop.f32.mrf.mxu2  ;;  %v1099_v37 = vpop.f32.mrf.mxu3  ;;  %v1159_v49 = vmul.f32 0.5, %v1155_v48 }
 0x2d9   :  { %v1080_v38 = vadd.f32 %v1079_v35, %v999_v23  ;;  %v1100_v39 = vadd.f32 %v1099_v37, %v1019_v24 }
 0x2db   :  { %v1152_v43 = vadd.f32 %v1144_v33, %v1080_v38  ;;  %v1153_v44 = vadd.f32 %v1145_v34, %v1100_v39 }
 0x2dd   :  { %v1156_v45 = vmul.f32 0.5, %v1152_v43  ;;  %v1157_v46 = vmul.f32 0.5, %v1153_v44 }
 0x2df   :  { %1290 = vtanh.f32 %v1156_v45 }
 0x2e0   :  { %1292 = vtanh.f32 %v1157_v46 }
 0x2e1   :  { %1294 = vtanh.f32 %v1154_v47 }
 0x2e2   :  { %1296 = vtanh.f32 %v1159_v49 }
 0x2e5   :  { %v1291_v50 = vpop.eup %1290 }
 0x2e6   :  { %v1293_v51 = vpop.eup %1292  ;;  %v1164_v52 = vadd.f32 1.0, %v1291_v50 }
 0x2e7   :  { %v1165_v53 = vadd.f32 1.0, %v1293_v51  ;;  %v1295_v56 = vpop.eup %1294 }
 0x2e8   :  { %v1167_v54 = vmul.f32 0.5, %v1164_v52  ;;  %v1297_v60 = vpop.eup %1296 }
 0x2e9   :  { %v1168_v57 = vmul.f32 0.5, %v1165_v53  ;;  %v1166_v62 = vadd.f32 1.0, %v1297_v60 }
 0x2ea   :  { %v1171_v58 = vmul.f32 %v1295_v56, %v1167_v54 }
 0x2eb   :  { %v1170_v59 = vmul.f32 %v1248_v55, %v1168_v57  ;;  %v1169_v63 = vmul.f32 0.5, %v1166_v62 }
 0x2ed   :  { %v1172_v61 = vadd.f32 %v1171_v58, %v1170_v59 }
 0x2ef   :  { %1298 = vtanh.f32 %v1172_v61  ;;  %1257 = vst [vmem:[%s1765_s15 + $0x28] sm:$0xff] %v1172_v61 }
 0x2f5   :  { %v1299_v0 = vpop.eup %1298 }
 0x2f6   :  { %v1174_v1 = vmul.f32 %v1299_v0, %v1169_v63 }
 0x2f8   :  { %1213 = vmatmul.f32.vlgmr.msrb.gmra.mxu2 %v1174_v1  ;;  %1226 = vst [vmem:[%s1765_s15 + $0x10] sm:$0xff] %v1174_v1 }
 0x37b   :  { %v1214_v3 = vpop.f32.mrf.mxu2 }
 0x37c   :  { %v1215_v4 = vadd.f32 %v1269_v2, %v1214_v3 }
 0x37e   :  { %1217 = vst [vmem:[%s1764_s14] sm:$0xff] %v1215_v4 }
 0x37f   :  { %1242 = vsyncpa [#allocation5], 1 }
 0x380   :  { %1243 = vsyncpa [#allocation7], 1 }
 0x381   :  { %1244 = vsyncpa [#allocation10], 1 }
 0x382   :  { %1245 = vsyncpa [#allocation13], 1 }

</bundles_post_ra>
